<compile_context>
chip_gen: v5e
topology: v5e:2x2
jax: 0.10.0
libtpu: 0.0.40
codegen_flags: <defaults>
</compile_context>

<pallas_src>
import math
import numpy as np
import jax
import jax.numpy as jnp
from jax.experimental import pallas as pl
from jax.experimental.pallas import tpu as pltpu

# ---------------- sizes (small, consistent with the module) ----------------
BATCH = 2
SEQ = 16
D_MODEL = 32
D_STATE = 64
LN_EPS = 1e-5

# ---- packed parameter-slab row offsets (all sublane-tile aligned) ----------
# row 0            : [ ln_w(0:32) | ln_b(32:64) | b_glu(64:128) ]
# row 1            : [ lam_re(0:64) | lam_im(64:128) ]
# rows  8 .. 40    : [ Bn_re^T | Bn_im^T ]            (32, 128)
# rows 40 .. 200   : [ C_re^T ; -C_im^T ; D^T ]       (160, 32)  in lanes 0:32
# rows 200 .. 232  : W_glu^T                          (32, 64)   in lanes 0:64
ROW_WB = 8
ROW_WOUT = ROW_WB + D_MODEL                       # 40
ROW_WGLU = ROW_WOUT + 2 * D_STATE + D_MODEL       # 200
SLAB_ROWS = ROW_WGLU + D_MODEL                    # 232


def _gelu(x):
    # TODO(synk): PyTorch nn.GELU() default is the exact erf GELU; tanh approximation
    # is used here because erf lowering in Mosaic is not guaranteed on all generations.
    return jax.nn.gelu(x, approximate=True)


# ------------------------------- kernel ------------------------------------
def dwn_block_kernel(x_ref, p_ref, out_ref):
    x = x_ref[...]                                            # (B*L, D) = (32, 32), batch-major

    # ---- unpack the single parameter slab (static ref slices: cheap VMEM loads) ----
    ln_w = p_ref[0:1, 0:D_MODEL]                              # (1, 32)
    ln_b = p_ref[0:1, D_MODEL:2 * D_MODEL]                    # (1, 32)
    b_glu = p_ref[0:1, 2 * D_MODEL:4 * D_MODEL]               # (1, 64)
    lam_re = p_ref[1:2, 0:D_STATE]                            # (1, 64) carry-shaped: no per-step broadcast
    lam_im = p_ref[1:2, D_STATE:2 * D_STATE]                  # (1, 64)

    # ---- LayerNorm (biased variance, like nn.LayerNorm) ----
    mean = jnp.mean(x, axis=-1, keepdims=True)
    cent = x - mean
    var = jnp.mean(cent * cent, axis=-1, keepdims=True)
    z = cent * jax.lax.rsqrt(var + LN_EPS) * ln_w + ln_b      # (32, 32)

    # ---- LRU input projection: one lane-dense MXU matmul -> [bu_re | bu_im] ----
    bu = jnp.dot(z, p_ref[ROW_WB:ROW_WB + D_MODEL, :],
                 preferred_element_type=jnp.float32)          # (32, 128)
    bu_re = bu[:, :D_STATE]                                   # (32, 64)
    bu_im = bu[:, D_STATE:]                                   # (32, 64)

    # ---- LRU recurrence: two independent per-batch carry chains, fully unrolled,
    #      carries kept in vregs (no VMEM scratch round trip). Rows are batch-major
    #      (row r = b*SEQ + t), matching the input layout, so no transposes anywhere.
    re_rows = [None] * (BATCH * SEQ)
    im_rows = [None] * (BATCH * SEQ)
    for b in range(BATCH):
        r0 = b * SEQ
        s_re = bu_re[r0:r0 + 1, :]                            # zero initial state -> s_0 = bu_0
        s_im = bu_im[r0:r0 + 1, :]
        re_rows[r0], im_rows[r0] = s_re, s_im
        for t in range(1, SEQ):
            r = r0 + t
            u_re = bu_re[r:r + 1, :]
            u_im = bu_im[r:r + 1, :]
            s_re, s_im = (lam_re * s_re - lam_im * s_im + u_re,
                          lam_im * s_re + lam_re * s_im + u_im)
            re_rows[r], im_rows[r] = s_re, s_im
    st_re = jnp.concatenate(re_rows, axis=0)                  # (32, 64) batch-major rows
    st_im = jnp.concatenate(im_rows, axis=0)                  # (32, 64)

    # ---- fused output projection (single MXU pass):
    #      y = Re(C s) + D z = [s_re | s_im | z] @ [C_re^T ; -C_im^T ; D^T] ----
    zy = jnp.concatenate([st_re, st_im, z], axis=-1)          # (32, 160)
    y = jnp.dot(zy, p_ref[ROW_WOUT:ROW_WOUT + 2 * D_STATE + D_MODEL, 0:D_MODEL],
                preferred_element_type=jnp.float32)           # (32, 32)

    # ---- GLU feed-forward: GELU -> Linear(D, 2D) -> a * sigmoid(b) ----
    h = _gelu(y)
    g = jnp.dot(h, p_ref[ROW_WGLU:ROW_WGLU + D_MODEL, 0:2 * D_MODEL],
                preferred_element_type=jnp.float32) + b_glu   # (32, 64)
    ff = g[:, :D_MODEL] * jax.nn.sigmoid(g[:, D_MODEL:])

    # ---- residual (output stays batch-major; wrapper reshape is free) ----
    out_ref[...] = (ff + x).astype(out_ref.dtype)


# ------------------------------ wrapper -------------------------------------
def dwn_block(x, params):
    B, L, D = x.shape
    assert (B, L, D) == (BATCH, SEQ, D_MODEL)
    LB = B * L

    # batch-major flatten is a FREE reshape (contiguous) — no XLA transpose op.
    x_flat = x.reshape(LB, D)
    slab = params["slab"]

    out_flat = pl.pallas_call(
        dwn_block_kernel,
        out_shape=jax.ShapeDtypeStruct((LB, D), x.dtype),
        grid=(1,),                                            # batch fused: single invocation
        in_specs=[
            pl.BlockSpec((LB, D), lambda i: (0, 0)),          # x (batch-major)
            pl.BlockSpec((SLAB_ROWS, 128), lambda i: (0, 0)), # all parameters, one DMA
        ],
        out_specs=pl.BlockSpec((LB, D), lambda i: (0, 0)),
        compiler_params=pltpu.CompilerParams(dimension_semantics=("arbitrary",)),
    )(x_flat, slab)

    return out_flat.reshape(B, L, D)                          # free reshape back


# -------------------------- parameter construction ---------------------------
def make_params(key):
    rmin, rmax, max_phase = 0.0, 1.0, 2.0 * math.pi
    ks = jax.random.split(key, 9)

    # LayerNorm
    ln_w = jnp.ones((D_MODEL,), jnp.float32)
    ln_b = jnp.zeros((D_MODEL,), jnp.float32)

    # LRU parameters (shapes follow the standard LRU __init__)
    D_mat = jax.random.normal(ks[0], (D_MODEL, D_MODEL)) / math.sqrt(D_MODEL)
    u1 = jax.random.uniform(ks[1], (D_STATE,), minval=1e-3, maxval=1.0)
    u2 = jax.random.uniform(ks[2], (D_STATE,), minval=1e-3, maxval=1.0)
    nu_log = jnp.log(-0.5 * jnp.log(u1 * (rmax + rmin) * (rmax - rmin) + rmin ** 2))
    theta_log = jnp.log(max_phase * u2)
    lam_mod = jnp.exp(-jnp.exp(nu_log))
    gamma = jnp.sqrt(1.0 - lam_mod ** 2)
    lam_re = lam_mod * jnp.cos(jnp.exp(theta_log))
    lam_im = lam_mod * jnp.sin(jnp.exp(theta_log))
    B_re = jax.random.normal(ks[3], (D_STATE, D_MODEL)) / math.sqrt(2 * D_MODEL)
    B_im = jax.random.normal(ks[4], (D_STATE, D_MODEL)) / math.sqrt(2 * D_MODEL)
    C_re = jax.random.normal(ks[5], (D_MODEL, D_STATE)) / math.sqrt(D_STATE)
    C_im = jax.random.normal(ks[6], (D_MODEL, D_STATE)) / math.sqrt(D_STATE)
    Bn_re = gamma[:, None] * B_re
    Bn_im = gamma[:, None] * B_im

    # GLU feed-forward Linear(D, 2D) (PyTorch default uniform init bounds)
    bound = 1.0 / math.sqrt(D_MODEL)
    W_glu = jax.random.uniform(ks[7], (2 * D_MODEL, D_MODEL), minval=-bound, maxval=bound)
    b_glu = jax.random.uniform(ks[8], (2 * D_MODEL,), minval=-bound, maxval=bound)

    f32 = lambda a: np.asarray(a, np.float32)

    # raw (unpacked) entries, used by the pure-JAX reference
    params = dict(
        ln_w=jnp.asarray(f32(ln_w))[None, :], ln_b=jnp.asarray(f32(ln_b))[None, :],
        lam_re=jnp.asarray(f32(lam_re))[None, :], lam_im=jnp.asarray(f32(lam_im))[None, :],
        bn_re_t=jnp.asarray(f32(Bn_re).T), bn_im_t=jnp.asarray(f32(Bn_im).T),
        c_re_t=jnp.asarray(f32(C_re).T), c_im_t=jnp.asarray(f32(C_im).T),
        d_t=jnp.asarray(f32(D_mat).T),
        w_glu_t=jnp.asarray(f32(W_glu).T), b_glu=jnp.asarray(f32(b_glu))[None, :],
    )

    # single packed parameter slab (kernel input), built host-side once
    slab = np.zeros((SLAB_ROWS, 128), np.float32)
    slab[0, 0:D_MODEL] = f32(ln_w)
    slab[0, D_MODEL:2 * D_MODEL] = f32(ln_b)
    slab[0, 2 * D_MODEL:4 * D_MODEL] = f32(b_glu)
    slab[1, 0:D_STATE] = f32(lam_re)
    slab[1, D_STATE:2 * D_STATE] = f32(lam_im)
    slab[ROW_WB:ROW_WB + D_MODEL, :] = np.concatenate([f32(Bn_re).T, f32(Bn_im).T], axis=1)
    slab[ROW_WOUT:ROW_WOUT + 2 * D_STATE + D_MODEL, 0:D_MODEL] = np.concatenate(
        [f32(C_re).T, -f32(C_im).T, f32(D_mat).T], axis=0)
    slab[ROW_WGLU:ROW_WGLU + D_MODEL, 0:2 * D_MODEL] = f32(W_glu).T
    params["slab"] = jnp.asarray(slab)
    return params


# ------------------------------ pure-JAX reference ---------------------------
def reference(x, p):
    mean = x.mean(-1, keepdims=True)
    var = ((x - mean) ** 2).mean(-1, keepdims=True)
    z = (x - mean) / jnp.sqrt(var + LN_EPS) * p["ln_w"][0] + p["ln_b"][0]
    bu = (z @ p["bn_re_t"]) + 1j * (z @ p["bn_im_t"])                    # (B, L, S) complex
    lam = (p["lam_re"][0] + 1j * p["lam_im"][0]).astype(jnp.complex64)

    def step(s, u):
        s = lam * s + u
        return s, s

    _, states = jax.lax.scan(step, jnp.zeros((x.shape[0], D_STATE), jnp.complex64),
                             jnp.swapaxes(bu, 0, 1))
    states = jnp.swapaxes(states, 0, 1)                                  # (B, L, S)
    y = (states.real @ p["c_re_t"]) - (states.imag @ p["c_im_t"]) + z @ p["d_t"]
    h = _gelu(y)
    g = h @ p["w_glu_t"] + p["b_glu"][0]
    ff = g[..., :D_MODEL] * jax.nn.sigmoid(g[..., D_MODEL:])
    return ff + x


if __name__ == "__main__":
    key = jax.random.PRNGKey(0)
    k_x, k_p = jax.random.split(key)
    x = jax.random.normal(k_x, (BATCH, SEQ, D_MODEL), dtype=jnp.float32)
    params = make_params(k_p)

    out = jax.block_until_ready(dwn_block(x, params))
    ref = jax.block_until_ready(reference(x, params))
    np.testing.assert_allclose(np.asarray(out), np.asarray(ref), rtol=1e-3, atol=1e-3)
    print("KERNEL_OK")
</pallas_src>

<mosaic_0001>
module attributes {stable_mosaic.version = 11 : i64} {
  func.func @dwn_block_kernel(%arg0: i32, %arg1: memref<32x32xf32, #tpu.memory_space<vmem>>, %arg2: memref<232x128xf32, #tpu.memory_space<vmem>>, %arg3: memref<32x32xf32, #tpu.memory_space<vmem>>) attributes {dimension_semantics = [#tpu.dimension_semantics<arbitrary>], iteration_bounds = array<i64: 1>, scalar_prefetch = 0 : i64, scratch_operands = 0 : i64, tpu.core_type = #tpu.core_type<tc>, window_params = [{pipeline_mode = #tpu.pipeline_mode<synchronous>, transform_indices = @transform_0, window_bounds = array<i64: 32, 32>}, {pipeline_mode = #tpu.pipeline_mode<synchronous>, transform_indices = @transform_1, window_bounds = array<i64: 232, 128>}, {pipeline_mode = #tpu.pipeline_mode<synchronous>, transform_indices = @transform_2, window_bounds = array<i64: 32, 32>}]} {
    %c0 = arith.constant 0 : index
    %c0_0 = arith.constant 0 : index
    %0 = vector.load %arg1[%c0, %c0_0] : memref<32x32xf32, #tpu.memory_space<vmem>>, vector<32x32xf32>
    %c0_1 = arith.constant 0 : index
    %c0_2 = arith.constant 0 : index
    %1 = vector.load %arg2[%c0_1, %c0_2] : memref<232x128xf32, #tpu.memory_space<vmem>>, vector<1x32xf32>
    %c0_3 = arith.constant 0 : index
    %c32 = arith.constant 32 : index
    %2 = vector.load %arg2[%c0_3, %c32] : memref<232x128xf32, #tpu.memory_space<vmem>>, vector<1x32xf32>
    %c0_4 = arith.constant 0 : index
    %c64 = arith.constant 64 : index
    %3 = vector.load %arg2[%c0_4, %c64] : memref<232x128xf32, #tpu.memory_space<vmem>>, vector<1x64xf32>
    %c1 = arith.constant 1 : index
    %c0_5 = arith.constant 0 : index
    %4 = vector.load %arg2[%c1, %c0_5] : memref<232x128xf32, #tpu.memory_space<vmem>>, vector<1x64xf32>
    %c1_6 = arith.constant 1 : index
    %c64_7 = arith.constant 64 : index
    %5 = vector.load %arg2[%c1_6, %c64_7] : memref<232x128xf32, #tpu.memory_space<vmem>>, vector<1x64xf32>
    %cst = arith.constant dense<0.000000e+00> : vector<32xf32>
    %6 = vector.multi_reduction <add>, %0, %cst [1] : vector<32x32xf32> to vector<32xf32>
    %7 = vector.shape_cast %6 : vector<32xf32> to vector<32x1xf32>
    %cst_8 = arith.constant 3.200000e+01 : f32
    %8 = vector.broadcast %cst_8 : f32 to vector<32x1xf32>
    %9 = arith.divf %7, %8 : vector<32x1xf32>
    %10 = vector.broadcast %9 : vector<32x1xf32> to vector<32x32xf32>
    %11 = arith.subf %0, %10 : vector<32x32xf32>
    %12 = arith.mulf %11, %11 : vector<32x32xf32>
    %cst_9 = arith.constant dense<0.000000e+00> : vector<32xf32>
    %13 = vector.multi_reduction <add>, %12, %cst_9 [1] : vector<32x32xf32> to vector<32xf32>
    %14 = vector.shape_cast %13 : vector<32xf32> to vector<32x1xf32>
    %cst_10 = arith.constant 3.200000e+01 : f32
    %15 = vector.broadcast %cst_10 : f32 to vector<32x1xf32>
    %16 = arith.divf %14, %15 : vector<32x1xf32>
    %cst_11 = arith.constant 9.99999974E-6 : f32
    %17 = vector.broadcast %cst_11 : f32 to vector<32x1xf32>
    %18 = arith.addf %16, %17 : vector<32x1xf32>
    %19 = math.rsqrt %18 : vector<32x1xf32>
    %20 = vector.broadcast %19 : vector<32x1xf32> to vector<32x32xf32>
    %21 = arith.mulf %11, %20 : vector<32x32xf32>
    %22 = vector.broadcast %1 : vector<1x32xf32> to vector<32x32xf32>
    %23 = arith.mulf %21, %22 : vector<32x32xf32>
    %24 = vector.broadcast %2 : vector<1x32xf32> to vector<32x32xf32>
    %25 = arith.addf %23, %24 : vector<32x32xf32>
    %c8 = arith.constant 8 : index
    %c0_12 = arith.constant 0 : index
    %26 = vector.load %arg2[%c8, %c0_12] : memref<232x128xf32, #tpu.memory_space<vmem>>, vector<32x128xf32>
    %cst_13 = arith.constant dense<0.000000e+00> : vector<32x128xf32>
    %27 = tpu.matmul %25, %26, %cst_13 {dimension_numbers = #tpu.dot_dimension_numbers<[1], [0], [0], [1], [0, 0, 1, 1], [], []>} : vector<32x32xf32>, vector<32x128xf32>, vector<32x128xf32> -> vector<32x128xf32>
    %28 = vector.extract_strided_slice %27 {offsets = [0, 0], sizes = [32, 64], strides = [1, 1]} : vector<32x128xf32> to vector<32x64xf32>
    %29 = vector.extract_strided_slice %27 {offsets = [0, 64], sizes = [32, 64], strides = [1, 1]} : vector<32x128xf32> to vector<32x64xf32>
    %30 = vector.extract_strided_slice %28 {offsets = [0, 0], sizes = [1, 64], strides = [1, 1]} : vector<32x64xf32> to vector<1x64xf32>
    %31 = vector.extract_strided_slice %29 {offsets = [0, 0], sizes = [1, 64], strides = [1, 1]} : vector<32x64xf32> to vector<1x64xf32>
    %32 = vector.extract_strided_slice %28 {offsets = [1, 0], sizes = [1, 64], strides = [1, 1]} : vector<32x64xf32> to vector<1x64xf32>
    %33 = vector.extract_strided_slice %29 {offsets = [1, 0], sizes = [1, 64], strides = [1, 1]} : vector<32x64xf32> to vector<1x64xf32>
    %34 = arith.mulf %4, %30 : vector<1x64xf32>
    %35 = arith.mulf %5, %31 : vector<1x64xf32>
    %36 = arith.subf %34, %35 : vector<1x64xf32>
    %37 = arith.addf %36, %32 : vector<1x64xf32>
    %38 = arith.mulf %5, %30 : vector<1x64xf32>
    %39 = arith.mulf %4, %31 : vector<1x64xf32>
    %40 = arith.addf %38, %39 : vector<1x64xf32>
    %41 = arith.addf %40, %33 : vector<1x64xf32>
    %42 = vector.extract_strided_slice %28 {offsets = [2, 0], sizes = [1, 64], strides = [1, 1]} : vector<32x64xf32> to vector<1x64xf32>
    %43 = vector.extract_strided_slice %29 {offsets = [2, 0], sizes = [1, 64], strides = [1, 1]} : vector<32x64xf32> to vector<1x64xf32>
    %44 = arith.mulf %4, %37 : vector<1x64xf32>
    %45 = arith.mulf %5, %41 : vector<1x64xf32>
    %46 = arith.subf %44, %45 : vector<1x64xf32>
    %47 = arith.addf %46, %42 : vector<1x64xf32>
    %48 = arith.mulf %5, %37 : vector<1x64xf32>
    %49 = arith.mulf %4, %41 : vector<1x64xf32>
    %50 = arith.addf %48, %49 : vector<1x64xf32>
    %51 = arith.addf %50, %43 : vector<1x64xf32>
    %52 = vector.extract_strided_slice %28 {offsets = [3, 0], sizes = [1, 64], strides = [1, 1]} : vector<32x64xf32> to vector<1x64xf32>
    %53 = vector.extract_strided_slice %29 {offsets = [3, 0], sizes = [1, 64], strides = [1, 1]} : vector<32x64xf32> to vector<1x64xf32>
    %54 = arith.mulf %4, %47 : vector<1x64xf32>
    %55 = arith.mulf %5, %51 : vector<1x64xf32>
    %56 = arith.subf %54, %55 : vector<1x64xf32>
    %57 = arith.addf %56, %52 : vector<1x64xf32>
    %58 = arith.mulf %5, %47 : vector<1x64xf32>
    %59 = arith.mulf %4, %51 : vector<1x64xf32>
    %60 = arith.addf %58, %59 : vector<1x64xf32>
    %61 = arith.addf %60, %53 : vector<1x64xf32>
    %62 = vector.extract_strided_slice %28 {offsets = [4, 0], sizes = [1, 64], strides = [1, 1]} : vector<32x64xf32> to vector<1x64xf32>
    %63 = vector.extract_strided_slice %29 {offsets = [4, 0], sizes = [1, 64], strides = [1, 1]} : vector<32x64xf32> to vector<1x64xf32>
    %64 = arith.mulf %4, %57 : vector<1x64xf32>
    %65 = arith.mulf %5, %61 : vector<1x64xf32>
    %66 = arith.subf %64, %65 : vector<1x64xf32>
    %67 = arith.addf %66, %62 : vector<1x64xf32>
    %68 = arith.mulf %5, %57 : vector<1x64xf32>
    %69 = arith.mulf %4, %61 : vector<1x64xf32>
    %70 = arith.addf %68, %69 : vector<1x64xf32>
    %71 = arith.addf %70, %63 : vector<1x64xf32>
    %72 = vector.extract_strided_slice %28 {offsets = [5, 0], sizes = [1, 64], strides = [1, 1]} : vector<32x64xf32> to vector<1x64xf32>
    %73 = vector.extract_strided_slice %29 {offsets = [5, 0], sizes = [1, 64], strides = [1, 1]} : vector<32x64xf32> to vector<1x64xf32>
    %74 = arith.mulf %4, %67 : vector<1x64xf32>
    %75 = arith.mulf %5, %71 : vector<1x64xf32>
    %76 = arith.subf %74, %75 : vector<1x64xf32>
    %77 = arith.addf %76, %72 : vector<1x64xf32>
    %78 = arith.mulf %5, %67 : vector<1x64xf32>
    %79 = arith.mulf %4, %71 : vector<1x64xf32>
    %80 = arith.addf %78, %79 : vector<1x64xf32>
    %81 = arith.addf %80, %73 : vector<1x64xf32>
    %82 = vector.extract_strided_slice %28 {offsets = [6, 0], sizes = [1, 64], strides = [1, 1]} : vector<32x64xf32> to vector<1x64xf32>
    %83 = vector.extract_strided_slice %29 {offsets = [6, 0], sizes = [1, 64], strides = [1, 1]} : vector<32x64xf32> to vector<1x64xf32>
    %84 = arith.mulf %4, %77 : vector<1x64xf32>
    %85 = arith.mulf %5, %81 : vector<1x64xf32>
    %86 = arith.subf %84, %85 : vector<1x64xf32>
    %87 = arith.addf %86, %82 : vector<1x64xf32>
    %88 = arith.mulf %5, %77 : vector<1x64xf32>
    %89 = arith.mulf %4, %81 : vector<1x64xf32>
    %90 = arith.addf %88, %89 : vector<1x64xf32>
    %91 = arith.addf %90, %83 : vector<1x64xf32>
    %92 = vector.extract_strided_slice %28 {offsets = [7, 0], sizes = [1, 64], strides = [1, 1]} : vector<32x64xf32> to vector<1x64xf32>
    %93 = vector.extract_strided_slice %29 {offsets = [7, 0], sizes = [1, 64], strides = [1, 1]} : vector<32x64xf32> to vector<1x64xf32>
    %94 = arith.mulf %4, %87 : vector<1x64xf32>
    %95 = arith.mulf %5, %91 : vector<1x64xf32>
    %96 = arith.subf %94, %95 : vector<1x64xf32>
    %97 = arith.addf %96, %92 : vector<1x64xf32>
    %98 = arith.mulf %5, %87 : vector<1x64xf32>
    %99 = arith.mulf %4, %91 : vector<1x64xf32>
    %100 = arith.addf %98, %99 : vector<1x64xf32>
    %101 = arith.addf %100, %93 : vector<1x64xf32>
    %102 = vector.extract_strided_slice %28 {offsets = [8, 0], sizes = [1, 64], strides = [1, 1]} : vector<32x64xf32> to vector<1x64xf32>
    %103 = vector.extract_strided_slice %29 {offsets = [8, 0], sizes = [1, 64], strides = [1, 1]} : vector<32x64xf32> to vector<1x64xf32>
    %104 = arith.mulf %4, %97 : vector<1x64xf32>
    %105 = arith.mulf %5, %101 : vector<1x64xf32>
    %106 = arith.subf %104, %105 : vector<1x64xf32>
    %107 = arith.addf %106, %102 : vector<1x64xf32>
    %108 = arith.mulf %5, %97 : vector<1x64xf32>
    %109 = arith.mulf %4, %101 : vector<1x64xf32>
    %110 = arith.addf %108, %109 : vector<1x64xf32>
    %111 = arith.addf %110, %103 : vector<1x64xf32>
    %112 = vector.extract_strided_slice %28 {offsets = [9, 0], sizes = [1, 64], strides = [1, 1]} : vector<32x64xf32> to vector<1x64xf32>
    %113 = vector.extract_strided_slice %29 {offsets = [9, 0], sizes = [1, 64], strides = [1, 1]} : vector<32x64xf32> to vector<1x64xf32>
    %114 = arith.mulf %4, %107 : vector<1x64xf32>
    %115 = arith.mulf %5, %111 : vector<1x64xf32>
    %116 = arith.subf %114, %115 : vector<1x64xf32>
    %117 = arith.addf %116, %112 : vector<1x64xf32>
    %118 = arith.mulf %5, %107 : vector<1x64xf32>
    %119 = arith.mulf %4, %111 : vector<1x64xf32>
    %120 = arith.addf %118, %119 : vector<1x64xf32>
    %121 = arith.addf %120, %113 : vector<1x64xf32>
    %122 = vector.extract_strided_slice %28 {offsets = [10, 0], sizes = [1, 64], strides = [1, 1]} : vector<32x64xf32> to vector<1x64xf32>
    %123 = vector.extract_strided_slice %29 {offsets = [10, 0], sizes = [1, 64], strides = [1, 1]} : vector<32x64xf32> to vector<1x64xf32>
    %124 = arith.mulf %4, %117 : vector<1x64xf32>
    %125 = arith.mulf %5, %121 : vector<1x64xf32>
    %126 = arith.subf %124, %125 : vector<1x64xf32>
    %127 = arith.addf %126, %122 : vector<1x64xf32>
    %128 = arith.mulf %5, %117 : vector<1x64xf32>
    %129 = arith.mulf %4, %121 : vector<1x64xf32>
    %130 = arith.addf %128, %129 : vector<1x64xf32>
    %131 = arith.addf %130, %123 : vector<1x64xf32>
    %132 = vector.extract_strided_slice %28 {offsets = [11, 0], sizes = [1, 64], strides = [1, 1]} : vector<32x64xf32> to vector<1x64xf32>
    %133 = vector.extract_strided_slice %29 {offsets = [11, 0], sizes = [1, 64], strides = [1, 1]} : vector<32x64xf32> to vector<1x64xf32>
    %134 = arith.mulf %4, %127 : vector<1x64xf32>
    %135 = arith.mulf %5, %131 : vector<1x64xf32>
    %136 = arith.subf %134, %135 : vector<1x64xf32>
    %137 = arith.addf %136, %132 : vector<1x64xf32>
    %138 = arith.mulf %5, %127 : vector<1x64xf32>
    %139 = arith.mulf %4, %131 : vector<1x64xf32>
    %140 = arith.addf %138, %139 : vector<1x64xf32>
    %141 = arith.addf %140, %133 : vector<1x64xf32>
    %142 = vector.extract_strided_slice %28 {offsets = [12, 0], sizes = [1, 64], strides = [1, 1]} : vector<32x64xf32> to vector<1x64xf32>
    %143 = vector.extract_strided_slice %29 {offsets = [12, 0], sizes = [1, 64], strides = [1, 1]} : vector<32x64xf32> to vector<1x64xf32>
    %144 = arith.mulf %4, %137 : vector<1x64xf32>
    %145 = arith.mulf %5, %141 : vector<1x64xf32>
    %146 = arith.subf %144, %145 : vector<1x64xf32>
    %147 = arith.addf %146, %142 : vector<1x64xf32>
    %148 = arith.mulf %5, %137 : vector<1x64xf32>
    %149 = arith.mulf %4, %141 : vector<1x64xf32>
    %150 = arith.addf %148, %149 : vector<1x64xf32>
    %151 = arith.addf %150, %143 : vector<1x64xf32>
    %152 = vector.extract_strided_slice %28 {offsets = [13, 0], sizes = [1, 64], strides = [1, 1]} : vector<32x64xf32> to vector<1x64xf32>
    %153 = vector.extract_strided_slice %29 {offsets = [13, 0], sizes = [1, 64], strides = [1, 1]} : vector<32x64xf32> to vector<1x64xf32>
    %154 = arith.mulf %4, %147 : vector<1x64xf32>
    %155 = arith.mulf %5, %151 : vector<1x64xf32>
    %156 = arith.subf %154, %155 : vector<1x64xf32>
    %157 = arith.addf %156, %152 : vector<1x64xf32>
    %158 = arith.mulf %5, %147 : vector<1x64xf32>
    %159 = arith.mulf %4, %151 : vector<1x64xf32>
    %160 = arith.addf %158, %159 : vector<1x64xf32>
    %161 = arith.addf %160, %153 : vector<1x64xf32>
    %162 = vector.extract_strided_slice %28 {offsets = [14, 0], sizes = [1, 64], strides = [1, 1]} : vector<32x64xf32> to vector<1x64xf32>
    %163 = vector.extract_strided_slice %29 {offsets = [14, 0], sizes = [1, 64], strides = [1, 1]} : vector<32x64xf32> to vector<1x64xf32>
    %164 = arith.mulf %4, %157 : vector<1x64xf32>
    %165 = arith.mulf %5, %161 : vector<1x64xf32>
    %166 = arith.subf %164, %165 : vector<1x64xf32>
    %167 = arith.addf %166, %162 : vector<1x64xf32>
    %168 = arith.mulf %5, %157 : vector<1x64xf32>
    %169 = arith.mulf %4, %161 : vector<1x64xf32>
    %170 = arith.addf %168, %169 : vector<1x64xf32>
    %171 = arith.addf %170, %163 : vector<1x64xf32>
    %172 = vector.extract_strided_slice %28 {offsets = [15, 0], sizes = [1, 64], strides = [1, 1]} : vector<32x64xf32> to vector<1x64xf32>
    %173 = vector.extract_strided_slice %29 {offsets = [15, 0], sizes = [1, 64], strides = [1, 1]} : vector<32x64xf32> to vector<1x64xf32>
    %174 = arith.mulf %4, %167 : vector<1x64xf32>
    %175 = arith.mulf %5, %171 : vector<1x64xf32>
    %176 = arith.subf %174, %175 : vector<1x64xf32>
    %177 = arith.addf %176, %172 : vector<1x64xf32>
    %178 = arith.mulf %5, %167 : vector<1x64xf32>
    %179 = arith.mulf %4, %171 : vector<1x64xf32>
    %180 = arith.addf %178, %179 : vector<1x64xf32>
    %181 = arith.addf %180, %173 : vector<1x64xf32>
    %182 = vector.extract_strided_slice %28 {offsets = [16, 0], sizes = [1, 64], strides = [1, 1]} : vector<32x64xf32> to vector<1x64xf32>
    %183 = vector.extract_strided_slice %29 {offsets = [16, 0], sizes = [1, 64], strides = [1, 1]} : vector<32x64xf32> to vector<1x64xf32>
    %184 = vector.extract_strided_slice %28 {offsets = [17, 0], sizes = [1, 64], strides = [1, 1]} : vector<32x64xf32> to vector<1x64xf32>
    %185 = vector.extract_strided_slice %29 {offsets = [17, 0], sizes = [1, 64], strides = [1, 1]} : vector<32x64xf32> to vector<1x64xf32>
    %186 = arith.mulf %4, %182 : vector<1x64xf32>
    %187 = arith.mulf %5, %183 : vector<1x64xf32>
    %188 = arith.subf %186, %187 : vector<1x64xf32>
    %189 = arith.addf %188, %184 : vector<1x64xf32>
    %190 = arith.mulf %5, %182 : vector<1x64xf32>
    %191 = arith.mulf %4, %183 : vector<1x64xf32>
    %192 = arith.addf %190, %191 : vector<1x64xf32>
    %193 = arith.addf %192, %185 : vector<1x64xf32>
    %194 = vector.extract_strided_slice %28 {offsets = [18, 0], sizes = [1, 64], strides = [1, 1]} : vector<32x64xf32> to vector<1x64xf32>
    %195 = vector.extract_strided_slice %29 {offsets = [18, 0], sizes = [1, 64], strides = [1, 1]} : vector<32x64xf32> to vector<1x64xf32>
    %196 = arith.mulf %4, %189 : vector<1x64xf32>
    %197 = arith.mulf %5, %193 : vector<1x64xf32>
    %198 = arith.subf %196, %197 : vector<1x64xf32>
    %199 = arith.addf %198, %194 : vector<1x64xf32>
    %200 = arith.mulf %5, %189 : vector<1x64xf32>
    %201 = arith.mulf %4, %193 : vector<1x64xf32>
    %202 = arith.addf %200, %201 : vector<1x64xf32>
    %203 = arith.addf %202, %195 : vector<1x64xf32>
    %204 = vector.extract_strided_slice %28 {offsets = [19, 0], sizes = [1, 64], strides = [1, 1]} : vector<32x64xf32> to vector<1x64xf32>
    %205 = vector.extract_strided_slice %29 {offsets = [19, 0], sizes = [1, 64], strides = [1, 1]} : vector<32x64xf32> to vector<1x64xf32>
    %206 = arith.mulf %4, %199 : vector<1x64xf32>
    %207 = arith.mulf %5, %203 : vector<1x64xf32>
    %208 = arith.subf %206, %207 : vector<1x64xf32>
    %209 = arith.addf %208, %204 : vector<1x64xf32>
    %210 = arith.mulf %5, %199 : vector<1x64xf32>
    %211 = arith.mulf %4, %203 : vector<1x64xf32>
    %212 = arith.addf %210, %211 : vector<1x64xf32>
    %213 = arith.addf %212, %205 : vector<1x64xf32>
    %214 = vector.extract_strided_slice %28 {offsets = [20, 0], sizes = [1, 64], strides = [1, 1]} : vector<32x64xf32> to vector<1x64xf32>
    %215 = vector.extract_strided_slice %29 {offsets = [20, 0], sizes = [1, 64], strides = [1, 1]} : vector<32x64xf32> to vector<1x64xf32>
    %216 = arith.mulf %4, %209 : vector<1x64xf32>
    %217 = arith.mulf %5, %213 : vector<1x64xf32>
    %218 = arith.subf %216, %217 : vector<1x64xf32>
    %219 = arith.addf %218, %214 : vector<1x64xf32>
    %220 = arith.mulf %5, %209 : vector<1x64xf32>
    %221 = arith.mulf %4, %213 : vector<1x64xf32>
    %222 = arith.addf %220, %221 : vector<1x64xf32>
    %223 = arith.addf %222, %215 : vector<1x64xf32>
    %224 = vector.extract_strided_slice %28 {offsets = [21, 0], sizes = [1, 64], strides = [1, 1]} : vector<32x64xf32> to vector<1x64xf32>
    %225 = vector.extract_strided_slice %29 {offsets = [21, 0], sizes = [1, 64], strides = [1, 1]} : vector<32x64xf32> to vector<1x64xf32>
    %226 = arith.mulf %4, %219 : vector<1x64xf32>
    %227 = arith.mulf %5, %223 : vector<1x64xf32>
    %228 = arith.subf %226, %227 : vector<1x64xf32>
    %229 = arith.addf %228, %224 : vector<1x64xf32>
    %230 = arith.mulf %5, %219 : vector<1x64xf32>
    %231 = arith.mulf %4, %223 : vector<1x64xf32>
    %232 = arith.addf %230, %231 : vector<1x64xf32>
    %233 = arith.addf %232, %225 : vector<1x64xf32>
    %234 = vector.extract_strided_slice %28 {offsets = [22, 0], sizes = [1, 64], strides = [1, 1]} : vector<32x64xf32> to vector<1x64xf32>
    %235 = vector.extract_strided_slice %29 {offsets = [22, 0], sizes = [1, 64], strides = [1, 1]} : vector<32x64xf32> to vector<1x64xf32>
    %236 = arith.mulf %4, %229 : vector<1x64xf32>
    %237 = arith.mulf %5, %233 : vector<1x64xf32>
    %238 = arith.subf %236, %237 : vector<1x64xf32>
    %239 = arith.addf %238, %234 : vector<1x64xf32>
    %240 = arith.mulf %5, %229 : vector<1x64xf32>
    %241 = arith.mulf %4, %233 : vector<1x64xf32>
    %242 = arith.addf %240, %241 : vector<1x64xf32>
    %243 = arith.addf %242, %235 : vector<1x64xf32>
    %244 = vector.extract_strided_slice %28 {offsets = [23, 0], sizes = [1, 64], strides = [1, 1]} : vector<32x64xf32> to vector<1x64xf32>
    %245 = vector.extract_strided_slice %29 {offsets = [23, 0], sizes = [1, 64], strides = [1, 1]} : vector<32x64xf32> to vector<1x64xf32>
    %246 = arith.mulf %4, %239 : vector<1x64xf32>
    %247 = arith.mulf %5, %243 : vector<1x64xf32>
    %248 = arith.subf %246, %247 : vector<1x64xf32>
    %249 = arith.addf %248, %244 : vector<1x64xf32>
    %250 = arith.mulf %5, %239 : vector<1x64xf32>
    %251 = arith.mulf %4, %243 : vector<1x64xf32>
    %252 = arith.addf %250, %251 : vector<1x64xf32>
    %253 = arith.addf %252, %245 : vector<1x64xf32>
    %254 = vector.extract_strided_slice %28 {offsets = [24, 0], sizes = [1, 64], strides = [1, 1]} : vector<32x64xf32> to vector<1x64xf32>
    %255 = vector.extract_strided_slice %29 {offsets = [24, 0], sizes = [1, 64], strides = [1, 1]} : vector<32x64xf32> to vector<1x64xf32>
    %256 = arith.mulf %4, %249 : vector<1x64xf32>
    %257 = arith.mulf %5, %253 : vector<1x64xf32>
    %258 = arith.subf %256, %257 : vector<1x64xf32>
    %259 = arith.addf %258, %254 : vector<1x64xf32>
    %260 = arith.mulf %5, %249 : vector<1x64xf32>
    %261 = arith.mulf %4, %253 : vector<1x64xf32>
    %262 = arith.addf %260, %261 : vector<1x64xf32>
    %263 = arith.addf %262, %255 : vector<1x64xf32>
    %264 = vector.extract_strided_slice %28 {offsets = [25, 0], sizes = [1, 64], strides = [1, 1]} : vector<32x64xf32> to vector<1x64xf32>
    %265 = vector.extract_strided_slice %29 {offsets = [25, 0], sizes = [1, 64], strides = [1, 1]} : vector<32x64xf32> to vector<1x64xf32>
    %266 = arith.mulf %4, %259 : vector<1x64xf32>
    %267 = arith.mulf %5, %263 : vector<1x64xf32>
    %268 = arith.subf %266, %267 : vector<1x64xf32>
    %269 = arith.addf %268, %264 : vector<1x64xf32>
    %270 = arith.mulf %5, %259 : vector<1x64xf32>
    %271 = arith.mulf %4, %263 : vector<1x64xf32>
    %272 = arith.addf %270, %271 : vector<1x64xf32>
    %273 = arith.addf %272, %265 : vector<1x64xf32>
    %274 = vector.extract_strided_slice %28 {offsets = [26, 0], sizes = [1, 64], strides = [1, 1]} : vector<32x64xf32> to vector<1x64xf32>
    %275 = vector.extract_strided_slice %29 {offsets = [26, 0], sizes = [1, 64], strides = [1, 1]} : vector<32x64xf32> to vector<1x64xf32>
    %276 = arith.mulf %4, %269 : vector<1x64xf32>
    %277 = arith.mulf %5, %273 : vector<1x64xf32>
    %278 = arith.subf %276, %277 : vector<1x64xf32>
    %279 = arith.addf %278, %274 : vector<1x64xf32>
    %280 = arith.mulf %5, %269 : vector<1x64xf32>
    %281 = arith.mulf %4, %273 : vector<1x64xf32>
    %282 = arith.addf %280, %281 : vector<1x64xf32>
    %283 = arith.addf %282, %275 : vector<1x64xf32>
    %284 = vector.extract_strided_slice %28 {offsets = [27, 0], sizes = [1, 64], strides = [1, 1]} : vector<32x64xf32> to vector<1x64xf32>
    %285 = vector.extract_strided_slice %29 {offsets = [27, 0], sizes = [1, 64], strides = [1, 1]} : vector<32x64xf32> to vector<1x64xf32>
    %286 = arith.mulf %4, %279 : vector<1x64xf32>
    %287 = arith.mulf %5, %283 : vector<1x64xf32>
    %288 = arith.subf %286, %287 : vector<1x64xf32>
    %289 = arith.addf %288, %284 : vector<1x64xf32>
    %290 = arith.mulf %5, %279 : vector<1x64xf32>
    %291 = arith.mulf %4, %283 : vector<1x64xf32>
    %292 = arith.addf %290, %291 : vector<1x64xf32>
    %293 = arith.addf %292, %285 : vector<1x64xf32>
    %294 = vector.extract_strided_slice %28 {offsets = [28, 0], sizes = [1, 64], strides = [1, 1]} : vector<32x64xf32> to vector<1x64xf32>
    %295 = vector.extract_strided_slice %29 {offsets = [28, 0], sizes = [1, 64], strides = [1, 1]} : vector<32x64xf32> to vector<1x64xf32>
    %296 = arith.mulf %4, %289 : vector<1x64xf32>
    %297 = arith.mulf %5, %293 : vector<1x64xf32>
    %298 = arith.subf %296, %297 : vector<1x64xf32>
    %299 = arith.addf %298, %294 : vector<1x64xf32>
    %300 = arith.mulf %5, %289 : vector<1x64xf32>
    %301 = arith.mulf %4, %293 : vector<1x64xf32>
    %302 = arith.addf %300, %301 : vector<1x64xf32>
    %303 = arith.addf %302, %295 : vector<1x64xf32>
    %304 = vector.extract_strided_slice %28 {offsets = [29, 0], sizes = [1, 64], strides = [1, 1]} : vector<32x64xf32> to vector<1x64xf32>
    %305 = vector.extract_strided_slice %29 {offsets = [29, 0], sizes = [1, 64], strides = [1, 1]} : vector<32x64xf32> to vector<1x64xf32>
    %306 = arith.mulf %4, %299 : vector<1x64xf32>
    %307 = arith.mulf %5, %303 : vector<1x64xf32>
    %308 = arith.subf %306, %307 : vector<1x64xf32>
    %309 = arith.addf %308, %304 : vector<1x64xf32>
    %310 = arith.mulf %5, %299 : vector<1x64xf32>
    %311 = arith.mulf %4, %303 : vector<1x64xf32>
    %312 = arith.addf %310, %311 : vector<1x64xf32>
    %313 = arith.addf %312, %305 : vector<1x64xf32>
    %314 = vector.extract_strided_slice %28 {offsets = [30, 0], sizes = [1, 64], strides = [1, 1]} : vector<32x64xf32> to vector<1x64xf32>
    %315 = vector.extract_strided_slice %29 {offsets = [30, 0], sizes = [1, 64], strides = [1, 1]} : vector<32x64xf32> to vector<1x64xf32>
    %316 = arith.mulf %4, %309 : vector<1x64xf32>
    %317 = arith.mulf %5, %313 : vector<1x64xf32>
    %318 = arith.subf %316, %317 : vector<1x64xf32>
    %319 = arith.addf %318, %314 : vector<1x64xf32>
    %320 = arith.mulf %5, %309 : vector<1x64xf32>
    %321 = arith.mulf %4, %313 : vector<1x64xf32>
    %322 = arith.addf %320, %321 : vector<1x64xf32>
    %323 = arith.addf %322, %315 : vector<1x64xf32>
    %324 = vector.extract_strided_slice %28 {offsets = [31, 0], sizes = [1, 64], strides = [1, 1]} : vector<32x64xf32> to vector<1x64xf32>
    %325 = vector.extract_strided_slice %29 {offsets = [31, 0], sizes = [1, 64], strides = [1, 1]} : vector<32x64xf32> to vector<1x64xf32>
    %326 = arith.mulf %4, %319 : vector<1x64xf32>
    %327 = arith.mulf %5, %323 : vector<1x64xf32>
    %328 = arith.subf %326, %327 : vector<1x64xf32>
    %329 = arith.addf %328, %324 : vector<1x64xf32>
    %330 = arith.mulf %5, %319 : vector<1x64xf32>
    %331 = arith.mulf %4, %323 : vector<1x64xf32>
    %332 = arith.addf %330, %331 : vector<1x64xf32>
    %333 = arith.addf %332, %325 : vector<1x64xf32>
    %334 = tpu.concatenate %30, %37, %47, %57, %67, %77, %87, %97, %107, %117, %127, %137, %147, %157, %167, %177 in 0 : vector<1x64xf32>, vector<1x64xf32>, vector<1x64xf32>, vector<1x64xf32>, vector<1x64xf32>, vector<1x64xf32>, vector<1x64xf32>, vector<1x64xf32>, vector<1x64xf32>, vector<1x64xf32>, vector<1x64xf32>, vector<1x64xf32>, vector<1x64xf32>, vector<1x64xf32>, vector<1x64xf32>, vector<1x64xf32> -> vector<16x64xf32>
    %335 = tpu.concatenate %182, %189, %199, %209, %219, %229, %239, %249, %259, %269, %279, %289, %299, %309, %319, %329 in 0 : vector<1x64xf32>, vector<1x64xf32>, vector<1x64xf32>, vector<1x64xf32>, vector<1x64xf32>, vector<1x64xf32>, vector<1x64xf32>, vector<1x64xf32>, vector<1x64xf32>, vector<1x64xf32>, vector<1x64xf32>, vector<1x64xf32>, vector<1x64xf32>, vector<1x64xf32>, vector<1x64xf32>, vector<1x64xf32> -> vector<16x64xf32>
    %336 = tpu.concatenate %334, %335 in 0 : vector<16x64xf32>, vector<16x64xf32> -> vector<32x64xf32>
    %337 = tpu.concatenate %31, %41, %51, %61, %71, %81, %91, %101, %111, %121, %131, %141, %151, %161, %171, %181 in 0 : vector<1x64xf32>, vector<1x64xf32>, vector<1x64xf32>, vector<1x64xf32>, vector<1x64xf32>, vector<1x64xf32>, vector<1x64xf32>, vector<1x64xf32>, vector<1x64xf32>, vector<1x64xf32>, vector<1x64xf32>, vector<1x64xf32>, vector<1x64xf32>, vector<1x64xf32>, vector<1x64xf32>, vector<1x64xf32> -> vector<16x64xf32>
    %338 = tpu.concatenate %183, %193, %203, %213, %223, %233, %243, %253, %263, %273, %283, %293, %303, %313, %323, %333 in 0 : vector<1x64xf32>, vector<1x64xf32>, vector<1x64xf32>, vector<1x64xf32>, vector<1x64xf32>, vector<1x64xf32>, vector<1x64xf32>, vector<1x64xf32>, vector<1x64xf32>, vector<1x64xf32>, vector<1x64xf32>, vector<1x64xf32>, vector<1x64xf32>, vector<1x64xf32>, vector<1x64xf32>, vector<1x64xf32> -> vector<16x64xf32>
    %339 = tpu.concatenate %337, %338 in 0 : vector<16x64xf32>, vector<16x64xf32> -> vector<32x64xf32>
    %340 = tpu.concatenate %336, %339, %25 in 1 : vector<32x64xf32>, vector<32x64xf32>, vector<32x32xf32> -> vector<32x160xf32>
    %c40 = arith.constant 40 : index
    %c0_14 = arith.constant 0 : index
    %341 = vector.load %arg2[%c40, %c0_14] : memref<232x128xf32, #tpu.memory_space<vmem>>, vector<160x32xf32>
    %cst_15 = arith.constant dense<0.000000e+00> : vector<32x32xf32>
    %342 = tpu.matmul %340, %341, %cst_15 {dimension_numbers = #tpu.dot_dimension_numbers<[1], [0], [0], [1], [0, 0, 1, 1], [], []>} : vector<32x160xf32>, vector<160x32xf32>, vector<32x32xf32> -> vector<32x32xf32>
    %343 = arith.mulf %342, %342 : vector<32x32xf32>
    %344 = arith.mulf %342, %343 : vector<32x32xf32>
    %cst_16 = arith.constant 4.471500e-02 : f32
    %345 = vector.broadcast %cst_16 : f32 to vector<32x32xf32>
    %346 = arith.mulf %345, %344 : vector<32x32xf32>
    %347 = arith.addf %342, %346 : vector<32x32xf32>
    %cst_17 = arith.constant 0.797884583 : f32
    %348 = vector.broadcast %cst_17 : f32 to vector<32x32xf32>
    %349 = arith.mulf %348, %347 : vector<32x32xf32>
    %350 = math.tanh %349 : vector<32x32xf32>
    %cst_18 = arith.constant 1.000000e+00 : f32
    %351 = vector.broadcast %cst_18 : f32 to vector<32x32xf32>
    %352 = arith.addf %351, %350 : vector<32x32xf32>
    %cst_19 = arith.constant 5.000000e-01 : f32
    %353 = vector.broadcast %cst_19 : f32 to vector<32x32xf32>
    %354 = arith.mulf %353, %352 : vector<32x32xf32>
    %355 = arith.mulf %342, %354 : vector<32x32xf32>
    %c200 = arith.constant 200 : index
    %c0_20 = arith.constant 0 : index
    %356 = vector.load %arg2[%c200, %c0_20] : memref<232x128xf32, #tpu.memory_space<vmem>>, vector<32x64xf32>
    %cst_21 = arith.constant dense<0.000000e+00> : vector<32x64xf32>
    %357 = tpu.matmul %355, %356, %cst_21 {dimension_numbers = #tpu.dot_dimension_numbers<[1], [0], [0], [1], [0, 0, 1, 1], [], []>} : vector<32x32xf32>, vector<32x64xf32>, vector<32x64xf32> -> vector<32x64xf32>
    %358 = vector.broadcast %3 : vector<1x64xf32> to vector<32x64xf32>
    %359 = arith.addf %357, %358 : vector<32x64xf32>
    %360 = vector.extract_strided_slice %359 {offsets = [0, 0], sizes = [32, 32], strides = [1, 1]} : vector<32x64xf32> to vector<32x32xf32>
    %361 = vector.extract_strided_slice %359 {offsets = [0, 32], sizes = [32, 32], strides = [1, 1]} : vector<32x64xf32> to vector<32x32xf32>
    %362 = arith.negf %361 : vector<32x32xf32>
    %363 = math.exp %362 : vector<32x32xf32>
    %cst_22 = arith.constant 1.000000e+00 : f32
    %364 = vector.broadcast %cst_22 : f32 to vector<32x32xf32>
    %365 = arith.addf %364, %363 : vector<32x32xf32>
    %366 = arith.divf %364, %365 : vector<32x32xf32>
    %367 = arith.mulf %360, %366 : vector<32x32xf32>
    %368 = arith.addf %367, %0 : vector<32x32xf32>
    %c0_23 = arith.constant 0 : index
    %c0_24 = arith.constant 0 : index
    %369 = vector.load %arg3[%c0_23, %c0_24] : memref<32x32xf32, #tpu.memory_space<vmem>>, vector<32x32xf32>
    tpu.vector_store %arg3[%c0_23, %c0_24], %368 {strides = array<i32>} : memref<32x32xf32, #tpu.memory_space<vmem>>, vector<32x32xf32>,
    return
  }
  func.func @transform_0(%arg0: i32) -> (i32, i32) {
    %c0_i32 = arith.constant 0 : i32
    %c0_i32_0 = arith.constant 0 : i32
    %c0_i32_1 = arith.constant 0 : i32
    return %c0_i32, %c0_i32_0 : i32, i32
  }
  func.func @transform_1(%arg0: i32) -> (i32, i32) {
    %c0_i32 = arith.constant 0 : i32
    %c0_i32_0 = arith.constant 0 : i32
    %c0_i32_1 = arith.constant 0 : i32
    return %c0_i32, %c0_i32_0 : i32, i32
  }
  func.func @transform_2(%arg0: i32) -> (i32, i32) {
    %c0_i32 = arith.constant 0 : i32
    %c0_i32_0 = arith.constant 0 : i32
    %c0_i32_1 = arith.constant 0 : i32
    return %c0_i32, %c0_i32_0 : i32, i32
  }
}

</mosaic_0001>

<bundles_post_ra>
// kernel: tpu_custom_call.1
= control target key start
LH: loop header
LB: loop body
LE: loop exit
PB: predicated region body
PF: predicated region fallthrough
CT: control target
= control target key end

     0   :  { %7 = vsyncpa [#allocation3], 0  ;;  %s2130_s0 = inlined_call_operand.hbm [shape: f32[32,32], index: 0, kind: input, shape index: {}]   ;;  %s2131_s1 = inlined_call_operand.hbm [shape: f32[232,128], index: 1, kind: input, shape index: {}]   ;;  %s2132_s2 = inlined_call_operand.hbm [shape: f32[32,32], index: 2, kind: output, shape index: {}]  }
   0x1   :  { %8 = vsyncpa [#allocation6], 0 }
   0x2   :  { %9 = vsyncpa [#allocation4], 0  ;;  %s14_s11 = sshll.u32 %s2130_s0, 4  ;;  %s1599_s12 = smov [#allocation2]   ;;  %s15_s11 = int_to_ptr.hbm [resolvable:$true] %s14_s11 }
   0x3   :  { %s16_s13 = sshll.u32 %s1599_s12, 4  ;;  %s27_s16 = sshll.u32 %s2131_s1, 4  ;;  %s17_s13 = int_to_ptr.vmem [resolvable:$true] %s16_s13  ;;  %s28_s16 = int_to_ptr.hbm [resolvable:$true] %s27_s16 }
   0x4   :  { %s1600_s17 = smov 128   ;;  %s1601_s18 = smov 8  }
   0x5   :  { %22 = dma.hbm_to_vmem [thread:$0]  %s15_s11, 512, %s17_s13, [#allocation3], %s1600_s17, %s1600_s17, %s1601_s18  }
   0x6   :  { %s1602_s19 = smov [#allocation5]  }
   0x7   :  { %s29_s20 = sshll.u32 %s1602_s19, 4  ;;  %s30_s20 = int_to_ptr.vmem [resolvable:$true] %s29_s20 }
   0x8   :  { %35 = dma.hbm_to_vmem [thread:$0]  %s28_s16, 3712, %s30_s20, [#allocation6], %s1600_s17, %s1600_s17, %s1601_s18  }
   0x9   :  { %1593 = dma.done.wait [#allocation3], 512  }
   0xa   :  { %1594 = vsyncadd [#allocation3], 4294966784 }
   0xb   :  { %1595 = dma.done.wait [#allocation6], 3712  }
   0xc   :  { %1596 = vsyncadd [#allocation6], 4294963584  ;;  %vm50_vm0 = vcmask 261120   ;;  %v44_v0 = vld [vmem:[#allocation2] sm:$0xff]  ;;  %v46_v2 = vld [vmem:[#allocation2 + $0x10] sm:$0xff]  ;;  %v1603_v6 = vmov 32.0  }
   0xd   :  { %v51_v1 = vsel %vm50_vm0, %v44_v0, 0.0  ;;  %v57_v3 = vsel %vm50_vm0, %v46_v2, 0.0  ;;  %v45_v4 = vld [vmem:[#allocation2 + $0x8] sm:$0xff]  ;;  %1481 = vrcp.f32 %v1603_v6  ;;  %v1637_v11 = vld [vmem:[#allocation5] ss:$0 sm:$0xff]  ;;  %s1604_s0 = smov 96  }
   0xe   :  { %52 = vadd.xlane.f32.xlu0 %v51_v1  ;;  %58 = vadd.xlane.f32.xlu1 %v57_v3  ;;  %v54_v5 = vsel %vm50_vm0, %v45_v4, 0.0  ;;  %v162_v29 = vld [vmem:[#allocation5 + $0x20] sm:$0xff]  ;;  %v161_v31 = vld [vmem:[#allocation5 + $0x18] sm:$0xff]  ;;  %v160_v33 = vld [vmem:[#allocation5 + $0x10] sm:$0xff]  ;;  %s1605_s1 = smov 64   ;;  %vm1001_vm11 = vcmask 1041408  }
   0xf   :  { %v1173_v30 = vld [vmem:[#allocation5 + $0xc0] sm:$0xff]  ;;  %187 = vmatpush.msra.mxu0 %v162_v29  ;;  %v1172_v32 = vld [vmem:[#allocation5 + $0xb8] sm:$0xff]  ;;  %v1171_v34 = vld [vmem:[#allocation5 + $0xb0] sm:$0xff]  ;;  %vm999_vm12 = vcmask 1040384   ;;  %vm1003_vm13 = vcmask 1042432   ;;  %vm1005_vm14 = vcmask 1043456  }
  0x10   :  { %1215 = vmatpush.msra.mxu2 %v1173_v30  ;;  %v159_v35 = vld [vmem:[#allocation5 + $0x8] sm:$0xff]  ;;  %vm1007_vm15 = vcmask 1044480   ;;  %s1606_s21 = smov [#allocation7]   ;;  %s1426_s25 = sshll.u32 %s2132_s2, 4  ;;  %s1427_s25 = int_to_ptr.hbm [resolvable:$true] %s1426_s25 }
  0x11   :  { %188 = vmatpush.msra.mxu0 %v161_v31  ;;  %v1170_v36 = vld [vmem:[#allocation5 + $0xa8] sm:$0xff]  ;;  %s1424_s22 = sshll.u32 %s1606_s21, 4  ;;  %s1425_s22 = int_to_ptr.vmem [resolvable:$true] %s1424_s22 }
  0x12   :  { %1216 = vmatpush.msra.mxu2 %v1172_v32 }
  0x13   :  { %v1482_v7 = vpop.eup %1481  ;;  %189 = vmatpush.msra.mxu0 %v160_v33 }
  0x14   :  { %v64_v8 = vmul.f32 32.0, %v1482_v7  ;;  %vm68_vm1 = vweird.f32 %v1482_v7  ;;  %1217 = vmatpush.msra.mxu2 %v1171_v34 }
  0x15   :  { %190 = vmatpush.msra.mxu0 %v159_v35 }
  0x16   :  { %55 = vadd.xlane.f32.xlu0 %v54_v5  ;;  %v65_v9 = vsub.f32 1.0, %v64_v8  ;;  %1218 = vmatpush.msra.mxu2 %v1170_v36 }
  0x18   :  { %v66_v10 = vmul.f32 %v1482_v7, %v65_v9 }
  0x1a   :  { %v67_v12 = vadd.f32 %v1482_v7, %v66_v10 }
  0x1c   :  { %v1641_v13 = vsel %vm68_vm1, %v1482_v7, %v67_v12  ;;  %vm1009_vm1 = vcmask 1045504  }
  0x2a   :  { %152 = vrot.lane.b32.xlu0 %v1637_v11, %s1604_s0 }
  0x81   :  { %v53_v14 = vpop.xlane.xlu0 %52  ;;  %v59_v18 = vpop.xlane.xlu1 %58 }
  0x82   :  { %v70_v15 = vmul.f32 %v1641_v13, %v53_v14  ;;  %v72_v22 = vmul.f32 %v1641_v13, %v59_v18 }
  0x84   :  { %v74_v16 = vsub.f32 %v44_v0, %v70_v15  ;;  %v1649_v24 = vsub.f32 %v46_v2, %v72_v22 }
  0x86   :  { %v78_v17 = vmul.f32 %v74_v16, %v74_v16  ;;  %v80_v27 = vmul.f32 %v1649_v24, %v1649_v24 }
  0x88   :  { %v82_v19 = vsel %vm50_vm0, %v78_v17, 0.0  ;;  %v88_v28 = vsel %vm50_vm0, %v80_v27, 0.0 }
  0x89   :  { %83 = vadd.xlane.f32.xlu1 %v82_v19  ;;  %v56_v20 = vpop.xlane.xlu0 %55 }
  0x8a   :  { %v71_v21 = vmul.f32 %v1641_v13, %v56_v20 }
  0x8c   :  { %v1647_v23 = vsub.f32 %v45_v4, %v71_v21 }
  0x8e   :  { %v79_v25 = vmul.f32 %v1647_v23, %v1647_v23 }
  0x90   :  { %v85_v26 = vsel %vm50_vm0, %v79_v25, 0.0 }
  0x91   :  { %86 = vadd.xlane.f32.xlu2 %v85_v26 }
  0x99   :  { %89 = vadd.xlane.f32.xlu2 %v88_v28 }
  0x9c   :  { %v1660_v58 = vpop.permute.xlu0 %152 }
  0xfc   :  { %v84_v37 = vpop.xlane.xlu1 %83 }
  0xfd   :  { %v94_v38 = vmul.f32 %v84_v37, %v1641_v13 }
  0xff   :  { %v98_v39 = vadd.f32 1e-05, %v94_v38 }
 0x101   :  { %1483 = vrsqrt.f32 %v98_v39  ;;  %vm108_vm3 = vweird.f32 %v98_v39 }
 0x104   :  { %v87_v40 = vpop.xlane.xlu2 %86 }
 0x105   :  { %v95_v41 = vmul.f32 %v87_v40, %v1641_v13 }
 0x107   :  { %v1484_v42 = vpop.eup %1483  ;;  %v99_v43 = vadd.f32 1e-05, %v95_v41 }
 0x108   :  { %v103_v44 = vmul.f32 %v1484_v42, %v98_v39  ;;  %vm109_vm2 = vweird.f32 %v1484_v42 }
 0x109   :  { %1485 = vrsqrt.f32 %v99_v43  ;;  %vm110_vm4 = vmor %vm108_vm3, %vm109_vm2  ;;  %vm118_vm5 = vweird.f32 %v99_v43 }
 0x10a   :  { %v104_v45 = vmul.f32 %v1484_v42, %v103_v44 }
 0x10c   :  { %v105_v46 = vmul.f32 0.5, %v104_v45  ;;  %v90_v47 = vpop.xlane.xlu2 %89 }
 0x10d   :  { %v96_v48 = vmul.f32 %v90_v47, %v1641_v13 }
 0x10e   :  { %v106_v49 = vsub.f32 1.5, %v105_v46 }
 0x10f   :  { %v1486_v50 = vpop.eup %1485  ;;  %v100_v51 = vadd.f32 1e-05, %v96_v48 }
 0x110   :  { %v107_v52 = vmul.f32 %v1484_v42, %v106_v49  ;;  %v113_v53 = vmul.f32 %v1486_v50, %v99_v43  ;;  %vm119_vm6 = vweird.f32 %v1486_v50 }
 0x111   :  { %1487 = vrsqrt.f32 %v100_v51  ;;  %vm120_vm7 = vmor %vm118_vm5, %vm119_vm6  ;;  %vm128_vm8 = vweird.f32 %v100_v51  ;;  %vm1011_vm5 = vcmask 1046528   ;;  %vm1149_vm6 = vcmask 523264  }
 0x112   :  { %v111_v54 = vsel %vm110_vm4, %v1484_v42, %v107_v52  ;;  %v114_v55 = vmul.f32 %v1486_v50, %v113_v53 }
 0x113   :  { %v142_v56 = vmul.f32 %v111_v54, %v74_v16  ;;  %v1680_v16 = vld [vmem:[#allocation5 + $0x1] sm:$0x1] }
 0x114   :  { %v115_v57 = vmul.f32 0.5, %v114_v55 }
 0x115   :  { %v147_v59 = vmul.f32 %v1637_v11, %v142_v56 }
 0x116   :  { %v116_v60 = vsub.f32 1.5, %v115_v57 }
 0x117   :  { %v1488_v61 = vpop.eup %1487  ;;  %v155_v62 = vadd.f32 %v1660_v58, %v147_v59 }
 0x118   :  { %v117_v63 = vmul.f32 %v1486_v50, %v116_v60  ;;  %v123_v0 = vmul.f32 %v1488_v61, %v100_v51  ;;  %vm129_vm9 = vweird.f32 %v1488_v61 }
 0x119   :  { %1440 = vmatmul.msk.f32.vlgmr.msra.gmra.mxu0 %vm50_vm0, %v155_v62  ;;  %1444 = vmatmul.msk.f32.vlgmr.msra.gmra.mxu2 %vm50_vm0, %v155_v62  ;;  %vm130_vm10 = vmor %vm128_vm8, %vm129_vm9 }
 0x11a   :  { %v121_v1 = vsel %vm120_vm7, %v1486_v50, %v117_v63  ;;  %v124_v2 = vmul.f32 %v1488_v61, %v123_v0 }
 0x11b   :  { %v143_v3 = vmul.f32 %v121_v1, %v1647_v23 }
 0x11c   :  { %v125_v4 = vmul.f32 0.5, %v124_v2 }
 0x11d   :  { %v148_v5 = vmul.f32 %v1637_v11, %v143_v3 }
 0x11e   :  { %v126_v6 = vsub.f32 1.5, %v125_v4 }
 0x11f   :  { %v156_v7 = vadd.f32 %v1660_v58, %v148_v5 }
 0x120   :  { %v127_v8 = vmul.f32 %v1488_v61, %v126_v6 }
 0x121   :  { %1441 = vmatmul.msk.f32.gmra.mxu0 %vm50_vm0, %v156_v7  ;;  %1445 = vmatmul.msk.f32.gmra.mxu2 %vm50_vm0, %v156_v7 }
 0x122   :  { %v131_v9 = vsel %vm130_vm10, %v1488_v61, %v127_v8 }
 0x123   :  { %v144_v10 = vmul.f32 %v131_v9, %v1649_v24 }
 0x125   :  { %v149_v12 = vmul.f32 %v1637_v11, %v144_v10 }
 0x127   :  { %v157_v14 = vadd.f32 %v1660_v58, %v149_v12 }
 0x129   :  { %1442 = vmatmul.msk.f32.gmra.mxu0 %vm50_vm0, %v157_v14  ;;  %1446 = vmatmul.msk.f32.gmra.mxu2 %vm50_vm0, %v157_v14 }
 0x196   :  { %v1676_v15 = vpop.f32.mrf.mxu0 }
 0x197   :  { %214 = vrot.lane.b32.xlu1 %v1676_v15, %s1605_s1  ;;  %v204_v17 = vmul.f32 %v1676_v15, %v1680_v16  ;;  %v211_v33 = vrot.slane %v1676_v15, 1  ;;  %v231_v62 = vrot.slane %v1676_v15, 2 }
 0x19e   :  { %v1684_v18 = vpop.f32.mrf.mxu0 }
 0x19f   :  { %206 = vrot.lane.b32.xlu1 %v204_v17, %s1605_s1 }
 0x1a6   :  { %v1687_v19 = vpop.f32.mrf.mxu0 }
 0x1a7   :  { %597 = vrot.lane.b32.xlu2 %v1687_v19, %s1605_s1  ;;  %v587_v24 = vmul.f32 %v1687_v19, %v1680_v16  ;;  %v594_v26 = vrot.slane %v1687_v19, 1  ;;  %v614_v49 = vrot.slane %v1687_v19, 2 }
 0x201   :  { %v598_v20 = vpop.permute.xlu2 %597 }
 0x202   :  { %v600_v21 = vmul.f32 %v598_v20, %v1680_v16 }
 0x204   :  { %602 = vrot.lane.b32.xlu2 %v600_v21, %s1605_s1 }
 0x209   :  { %v215_v22 = vpop.permute.xlu1 %214 }
 0x20a   :  { %v217_v23 = vmul.f32 %v215_v22, %v1680_v16 }
 0x20c   :  { %219 = vrot.lane.b32.xlu0 %v217_v23, %s1605_s1  ;;  %589 = vrot.lane.b32.xlu2 %v587_v24, %s1605_s1 }
 0x211   :  { %v207_v36 = vpop.permute.xlu1 %206 }
 0x212   :  { %v209_v37 = vsub.f32 %v204_v17, %v207_v36 }
 0x214   :  { %v1703_v38 = vadd.f32 %v211_v33, %v209_v37 }
 0x216   :  { %v224_v10 = vmul.f32 %v1703_v38, %v1680_v16 }
 0x25e   :  { %v603_v25 = vpop.permute.xlu2 %602 }
 0x25f   :  { %v605_v27 = vadd.f32 %v603_v25, %v600_v21 }
 0x261   :  { %v606_v28 = vadd.f32 %v605_v27, %v594_v26 }
 0x263   :  { %623 = vrot.lane.b32.xlu1 %v606_v28, %s1605_s1  ;;  %v608_v41 = vmul.f32 %v606_v28, %v1680_v16  ;;  %v1106_v51 = vrot.slane %v606_v28, 7 }
 0x265   :  { %v1135_v54 = vsel %vm999_vm12, %v1687_v19, %v1106_v51  ;;  %v970_v51 = vrot.slane %v1703_v38, 7 }
 0x266   :  { %v590_v29 = vpop.permute.xlu2 %589 }
 0x267   :  { %v592_v30 = vsub.f32 %v587_v24, %v590_v29 }
 0x269   :  { %v596_v31 = vadd.f32 %v594_v26, %v592_v30  ;;  %v640_v30 = vrot.slane %v1687_v19, 3 }
 0x26b   :  { %618 = vrot.lane.b32.xlu1 %v596_v31, %s1605_s1  ;;  %v607_v57 = vmul.f32 %v596_v31, %v1680_v16  ;;  %v1020_v0 = vrot.slane %v596_v31, 7 }
 0x26d   :  { %v1049_v6 = vsel %vm999_vm12, %v1687_v19, %v1020_v0 }
 0x27e   :  { %v220_v32 = vpop.permute.xlu0 %219 }
 0x27f   :  { %v222_v34 = vadd.f32 %v220_v32, %v217_v23 }
 0x281   :  { %v223_v35 = vadd.f32 %v222_v34, %v211_v33 }
 0x283   :  { %240 = vrot.lane.b32.xlu0 %v223_v35, %s1605_s1  ;;  %v225_v44 = vmul.f32 %v223_v35, %v1680_v16  ;;  %v1063_v1 = vrot.slane %v223_v35, 7 }
 0x285   :  { %v1092_v7 = vsel %vm999_vm12, %v1676_v15, %v1063_v1 }
 0x28b   :  { %235 = vrot.lane.b32.xlu0 %v1703_v38, %s1605_s1 }
 0x2d5   :  { %v624_v39 = vpop.permute.xlu1 %623 }
 0x2d6   :  { %v626_v40 = vmul.f32 %v624_v39, %v1680_v16 }
 0x2d8   :  { %628 = vrot.lane.b32.xlu0 %v626_v40, %s1605_s1 }
 0x2dd   :  { %v619_v46 = vpop.permute.xlu1 %618 }
 0x2de   :  { %v621_v47 = vmul.f32 %v619_v46, %v1680_v16 }
 0x2e0   :  { %610 = vrot.lane.b32.xlu0 %v608_v41, %s1605_s1 }
 0x2f5   :  { %v241_v42 = vpop.permute.xlu0 %240 }
 0x2f6   :  { %v243_v43 = vmul.f32 %v241_v42, %v1680_v16 }
 0x2f8   :  { %245 = vrot.lane.b32.xlu2 %v243_v43, %s1605_s1 }
 0x2fd   :  { %v236_v45 = vpop.permute.xlu0 %235 }
 0x2fe   :  { %v238_v55 = vmul.f32 %v236_v45, %v1680_v16 }
 0x300   :  { %227 = vrot.lane.b32.xlu2 %v225_v44, %s1605_s1  ;;  %v257_v44 = vrot.slane %v1676_v15, 3 }
 0x34a   :  { %v629_v48 = vpop.permute.xlu0 %628 }
 0x34b   :  { %v631_v50 = vadd.f32 %v629_v48, %v621_v47 }
 0x34d   :  { %v632_v52 = vadd.f32 %v631_v50, %v614_v49 }
 0x34f   :  { %v1108_v53 = vrot.slane %v632_v52, 6  ;;  %649 = vrot.lane.b32.xlu2 %v632_v52, %s1605_s1  ;;  %v634_v22 = vmul.f32 %v632_v52, %v1680_v16 }
 0x351   :  { %v1136_v56 = vsel %vm1001_vm11, %v1135_v54, %v1108_v53 }
 0x352   :  { %v611_v59 = vpop.permute.xlu0 %610  ;;  %v246_v60 = vpop.permute.xlu2 %245 }
 0x353   :  { %v613_v61 = vsub.f32 %v607_v57, %v611_v59  ;;  %v248_v63 = vadd.f32 %v246_v60, %v238_v55  ;;  %v1000_v55 = vsel %vm999_vm12, %v1676_v15, %v970_v51 }
 0x355   :  { %v616_v2 = vadd.f32 %v614_v49, %v613_v61  ;;  %v249_v3 = vadd.f32 %v248_v63, %v231_v62 }
 0x357   :  { %v1022_v4 = vrot.slane %v616_v2, 6  ;;  %v1065_v5 = vrot.slane %v249_v3, 6  ;;  %644 = vrot.lane.b32.xlu2 %v616_v2, %s1605_s1  ;;  %266 = vrot.lane.b32.xlu1 %v249_v3, %s1605_s1  ;;  %v251_v25 = vmul.f32 %v249_v3, %v1680_v16  ;;  %v633_v35 = vmul.f32 %v616_v2, %v1680_v16 }
 0x359   :  { %v1050_v8 = vsel %vm1001_vm11, %v1049_v6, %v1022_v4  ;;  %v1093_v9 = vsel %vm1001_vm11, %v1092_v7, %v1065_v5  ;;  %v666_v5 = vrot.slane %v1687_v19, 4 }
 0x35a   :  { %v228_v12 = vpop.permute.xlu2 %227 }
 0x35b   :  { %v230_v14 = vsub.f32 %v224_v10, %v228_v12 }
 0x35d   :  { %v233_v17 = vadd.f32 %v231_v62, %v230_v14 }
 0x35f   :  { %261 = vrot.lane.b32.xlu1 %v233_v17, %s1605_s1  ;;  %v250_v49 = vmul.f32 %v233_v17, %v1680_v16  ;;  %v972_v53 = vrot.slane %v233_v17, 6 }
 0x361   :  { %v1002_v57 = vsel %vm1001_vm11, %v1000_v55, %v972_v53 }
 0x3a9   :  { %v650_v20 = vpop.permute.xlu2 %649 }
 0x3aa   :  { %v652_v21 = vmul.f32 %v650_v20, %v1680_v16 }
 0x3ac   :  { %654 = vrot.lane.b32.xlu1 %v652_v21, %s1605_s1 }
 0x3b1   :  { %v645_v27 = vpop.permute.xlu2 %644 }
 0x3b2   :  { %v647_v28 = vmul.f32 %v645_v27, %v1680_v16 }
 0x3b4   :  { %636 = vrot.lane.b32.xlu1 %v634_v22, %s1605_s1 }
 0x3c9   :  { %v267_v23 = vpop.permute.xlu1 %266 }
 0x3ca   :  { %v269_v24 = vmul.f32 %v267_v23, %v1680_v16 }
 0x3cc   :  { %271 = vrot.lane.b32.xlu0 %v269_v24, %s1605_s1  ;;  %v283_v24 = vrot.slane %v1676_v15, 4 }
 0x3d1   :  { %v262_v26 = vpop.permute.xlu1 %261 }
 0x3d2   :  { %v264_v42 = vmul.f32 %v262_v26, %v1680_v16 }
 0x3d4   :  { %253 = vrot.lane.b32.xlu0 %v251_v25, %s1605_s1 }
 0x41e   :  { %v655_v29 = vpop.permute.xlu1 %654 }
 0x41f   :  { %v657_v31 = vadd.f32 %v655_v29, %v647_v28 }
 0x421   :  { %v658_v32 = vadd.f32 %v657_v31, %v640_v30 }
 0x423   :  { %v1110_v33 = vrot.slane %v658_v32, 5  ;;  %675 = vrot.lane.b32.xlu0 %v658_v32, %s1605_s1  ;;  %v660_v63 = vmul.f32 %v658_v32, %v1680_v16 }
 0x425   :  { %v1137_v34 = vsel %vm1003_vm13, %v1136_v56, %v1110_v33 }
 0x426   :  { %v637_v36 = vpop.permute.xlu1 %636 }
 0x427   :  { %v639_v37 = vsub.f32 %v633_v35, %v637_v36 }
 0x429   :  { %v642_v39 = vadd.f32 %v640_v30, %v639_v37 }
 0x42b   :  { %v1024_v40 = vrot.slane %v642_v39, 5  ;;  %670 = vrot.lane.b32.xlu0 %v642_v39, %s1605_s1 }
 0x42d   :  { %v1051_v41 = vsel %vm1003_vm13, %v1050_v8, %v1024_v40 }
 0x43e   :  { %v272_v43 = vpop.permute.xlu0 %271 }
 0x43f   :  { %v274_v45 = vadd.f32 %v272_v43, %v264_v42 }
 0x441   :  { %v275_v46 = vadd.f32 %v274_v45, %v257_v44 }
 0x443   :  { %v1067_v47 = vrot.slane %v275_v46, 5  ;;  %292 = vrot.lane.b32.xlu2 %v275_v46, %s1605_s1  ;;  %v277_v0 = vmul.f32 %v275_v46, %v1680_v16  ;;  %v692_v46 = vrot.slane %v1687_v19, 5 }
 0x445   :  { %v1094_v48 = vsel %vm1003_vm13, %v1093_v9, %v1067_v47  ;;  %v659_v9 = vmul.f32 %v642_v39, %v1680_v16 }
 0x446   :  { %v254_v50 = vpop.permute.xlu0 %253 }
 0x447   :  { %v256_v52 = vsub.f32 %v250_v49, %v254_v50 }
 0x449   :  { %v259_v54 = vadd.f32 %v257_v44, %v256_v52 }
 0x44b   :  { %v974_v56 = vrot.slane %v259_v54, 5  ;;  %287 = vrot.lane.b32.xlu2 %v259_v54, %s1605_s1  ;;  %v276_v28 = vmul.f32 %v259_v54, %v1680_v16 }
 0x44d   :  { %v1004_v59 = vsel %vm1003_vm13, %v1002_v57, %v974_v56  ;;  %v309_v56 = vrot.slane %v1676_v15, 5 }
 0x495   :  { %v676_v60 = vpop.permute.xlu0 %675 }
 0x496   :  { %v678_v61 = vmul.f32 %v676_v60, %v1680_v16 }
 0x498   :  { %680 = vrot.lane.b32.xlu2 %v678_v61, %s1605_s1 }
 0x49d   :  { %v293_v62 = vpop.permute.xlu2 %292  ;;  %v671_v2 = vpop.permute.xlu0 %670 }
 0x49e   :  { %v295_v38 = vmul.f32 %v293_v62, %v1680_v16  ;;  %v673_v3 = vmul.f32 %v671_v2, %v1680_v16 }
 0x4a0   :  { %662 = vrot.lane.b32.xlu2 %v660_v63, %s1605_s1  ;;  %297 = vrot.lane.b32.xlu1 %v295_v38, %s1605_s1 }
 0x4a5   :  { %v288_v1 = vpop.permute.xlu2 %287 }
 0x4a6   :  { %v290_v22 = vmul.f32 %v288_v1, %v1680_v16 }
 0x4a8   :  { %279 = vrot.lane.b32.xlu1 %v277_v0, %s1605_s1 }
 0x4f2   :  { %v681_v4 = vpop.permute.xlu2 %680 }
 0x4f3   :  { %v683_v6 = vadd.f32 %v681_v4, %v673_v3 }
 0x4f5   :  { %v684_v7 = vadd.f32 %v683_v6, %v666_v5  ;;  %v47_v6 = vld [vmem:[#allocation2 + $0x18] sm:$0xff] }
 0x4f7   :  { %v1112_v8 = vrot.slane %v684_v7, 4  ;;  %701 = vrot.lane.b32.xlu1 %v684_v7, %s1605_s1  ;;  %v686_v37 = vmul.f32 %v684_v7, %v1680_v16  ;;  %v60_v7 = vsel %vm50_vm0, %v47_v6, 0.0 }
 0x4f9   :  { %v1138_v10 = vsel %vm1005_vm14, %v1137_v34, %v1112_v8 }
 0x4fa   :  { %v663_v12 = vpop.permute.xlu2 %662 }
 0x4fb   :  { %v665_v14 = vsub.f32 %v659_v9, %v663_v12 }
 0x4fd   :  { %v668_v17 = vadd.f32 %v666_v5, %v665_v14 }
 0x4ff   :  { %v1026_v20 = vrot.slane %v668_v17, 4  ;;  %696 = vrot.lane.b32.xlu1 %v668_v17, %s1605_s1  ;;  %v685_v51 = vmul.f32 %v668_v17, %v1680_v16 }
 0x501   :  { %v1052_v21 = vsel %vm1005_vm14, %v1051_v41, %v1026_v20 }
 0x512   :  { %v298_v23 = vpop.permute.xlu1 %297 }
 0x513   :  { %v300_v25 = vadd.f32 %v298_v23, %v290_v22 }
 0x515   :  { %v301_v26 = vadd.f32 %v300_v25, %v283_v24 }
 0x517   :  { %v1069_v27 = vrot.slane %v301_v26, 4  ;;  %318 = vrot.lane.b32.xlu0 %v301_v26, %s1605_s1  ;;  %v303_v41 = vmul.f32 %v301_v26, %v1680_v16 }
 0x519   :  { %v1095_v29 = vsel %vm1005_vm14, %v1094_v48, %v1069_v27  ;;  %v335_v27 = vrot.slane %v1676_v15, 6 }
 0x51a   :  { %v280_v30 = vpop.permute.xlu1 %279 }
 0x51b   :  { %v282_v31 = vsub.f32 %v276_v28, %v280_v30 }
 0x51d   :  { %v285_v32 = vadd.f32 %v283_v24, %v282_v31 }
 0x51f   :  { %v976_v33 = vrot.slane %v285_v32, 4  ;;  %313 = vrot.lane.b32.xlu0 %v285_v32, %s1605_s1  ;;  %v302_v38 = vmul.f32 %v285_v32, %v1680_v16 }
 0x521   :  { %v1006_v34 = vsel %vm1005_vm14, %v1004_v59, %v976_v33 }
 0x569   :  { %v702_v35 = vpop.permute.xlu1 %701 }
 0x56a   :  { %v704_v36 = vmul.f32 %v702_v35, %v1680_v16  ;;  %v718_v35 = vrot.slane %v1687_v19, 6 }
 0x56c   :  { %706 = vrot.lane.b32.xlu0 %v704_v36, %s1605_s1 }
 0x571   :  { %v697_v43 = vpop.permute.xlu1 %696 }
 0x572   :  { %v699_v44 = vmul.f32 %v697_v43, %v1680_v16 }
 0x574   :  { %688 = vrot.lane.b32.xlu0 %v686_v37, %s1605_s1 }
 0x589   :  { %v319_v39 = vpop.permute.xlu0 %318 }
 0x58a   :  { %v321_v40 = vmul.f32 %v319_v39, %v1680_v16 }
 0x58c   :  { %323 = vrot.lane.b32.xlu2 %v321_v40, %s1605_s1 }
 0x591   :  { %v314_v42 = vpop.permute.xlu0 %313 }
 0x592   :  { %v316_v50 = vmul.f32 %v314_v42, %v1680_v16 }
 0x594   :  { %305 = vrot.lane.b32.xlu2 %v303_v41, %s1605_s1 }
 0x5de   :  { %v707_v45 = vpop.permute.xlu0 %706 }
 0x5df   :  { %v709_v47 = vadd.f32 %v707_v45, %v699_v44 }
 0x5e1   :  { %v710_v48 = vadd.f32 %v709_v47, %v692_v46 }
 0x5e3   :  { %v1114_v49 = vrot.slane %v710_v48, 3  ;;  %727 = vrot.lane.b32.xlu2 %v710_v48, %s1605_s1  ;;  %v712_v39 = vmul.f32 %v710_v48, %v1680_v16 }
 0x5e5   :  { %v1139_v52 = vsel %vm1007_vm15, %v1138_v10, %v1114_v49 }
 0x5e6   :  { %v689_v53 = vpop.permute.xlu0 %688  ;;  %v324_v54 = vpop.permute.xlu2 %323 }
 0x5e7   :  { %v691_v55 = vsub.f32 %v685_v51, %v689_v53  ;;  %v326_v57 = vadd.f32 %v324_v54, %v316_v50 }
 0x5e9   :  { %v1798_v59 = vadd.f32 %v692_v46, %v691_v55  ;;  %v327_v60 = vadd.f32 %v326_v57, %v309_v56 }
 0x5eb   :  { %v1028_v61 = vrot.slane %v1798_v59, 3  ;;  %v1071_v62 = vrot.slane %v327_v60, 3  ;;  %344 = vrot.lane.b32.xlu1 %v327_v60, %s1605_s1  ;;  %v329_v14 = vmul.f32 %v327_v60, %v1680_v16 }
 0x5ed   :  { %v1096_v63 = vsel %vm1007_vm15, %v1095_v29, %v1071_v62  ;;  %v1805_v0 = vsel %vm1007_vm15, %v1052_v21, %v1028_v61 }
 0x5ee   :  { %v306_v1 = vpop.permute.xlu2 %305 }
 0x5ef   :  { %v308_v2 = vsub.f32 %v302_v38, %v306_v1 }
 0x5f1   :  { %v311_v3 = vadd.f32 %v309_v56, %v308_v2  ;;  %v711_v2 = vmul.f32 %v1798_v59, %v1680_v16 }
 0x5f3   :  { %v978_v4 = vrot.slane %v311_v3, 3  ;;  %339 = vrot.lane.b32.xlu0 %v311_v3, %s1605_s1  ;;  %v328_v41 = vmul.f32 %v311_v3, %v1680_v16 }
 0x5f5   :  { %v1008_v5 = vsel %vm1007_vm15, %v1006_v34, %v978_v4 }
 0x5fb   :  { %722 = vrot.lane.b32.xlu0 %v1798_v59, %s1605_s1  ;;  %v1166_v59 = vld [vmem:[#allocation5 + $0x88] sm:$0xff] }
 0x615   :  { %61 = vadd.xlane.f32.xlu1 %v60_v7  ;;  %v1168_v7 = vld [vmem:[#allocation5 + $0x98] sm:$0xff] }
 0x63d   :  { %v728_v10 = vpop.permute.xlu2 %727 }
 0x63e   :  { %v730_v12 = vmul.f32 %v728_v10, %v1680_v16  ;;  %v1164_v10 = vld [vmem:[#allocation5 + $0x78] sm:$0xff] }
 0x65d   :  { %v345_v8 = vpop.permute.xlu1 %344 }
 0x65e   :  { %v347_v9 = vmul.f32 %v345_v8, %v1680_v16  ;;  %v1167_v8 = vld [vmem:[#allocation5 + $0x90] sm:$0xff] }
 0x660   :  { %349 = vrot.lane.b32.xlu2 %v347_v9, %s1605_s1  ;;  %v1165_v9 = vld [vmem:[#allocation5 + $0x80] sm:$0xff] }
 0x665   :  { %v340_v24 = vpop.permute.xlu0 %339 }
 0x666   :  { %v342_v25 = vmul.f32 %v340_v24, %v1680_v16 }
 0x668   :  { %732 = vrot.lane.b32.xlu2 %v730_v12, %s1605_s1  ;;  %v1163_v12 = vld [vmem:[#allocation5 + $0x70] sm:$0xff] }
 0x66d   :  { %v723_v30 = vpop.permute.xlu0 %722 }
 0x66e   :  { %v725_v32 = vmul.f32 %v723_v30, %v1680_v16 }
 0x670   :  { %331 = vrot.lane.b32.xlu2 %v329_v14, %s1605_s1 }
 0x688   :  { %v62_v17 = vpop.xlane.xlu1 %61 }
 0x689   :  { %v73_v20 = vmul.f32 %v1641_v13, %v62_v17  ;;  %v1162_v17 = vld [vmem:[#allocation5 + $0x68] sm:$0xff] }
 0x68b   :  { %v77_v21 = vsub.f32 %v47_v6, %v73_v20  ;;  %v1161_v20 = vld [vmem:[#allocation5 + $0x60] sm:$0xff] }
 0x68d   :  { %v81_v22 = vmul.f32 %v77_v21, %v77_v21 }
 0x68f   :  { %v91_v23 = vsel %vm50_vm0, %v81_v22, 0.0 }
 0x690   :  { %92 = vadd.xlane.f32.xlu0 %v91_v23  ;;  %v1159_v23 = vld [vmem:[#allocation5 + $0x50] sm:$0xff] }
 0x6ba   :  { %v350_v26 = vpop.permute.xlu2 %349 }
 0x6bb   :  { %v352_v28 = vadd.f32 %v350_v26, %v342_v25  ;;  %v361_v25 = vrot.slane %v1676_v15, 7  ;;  %v1156_v15 = vld [vmem:[#allocation5 + $0x38] sm:$0xff] }
 0x6bd   :  { %v353_v29 = vadd.f32 %v352_v28, %v335_v27 }
 0x6bf   :  { %v1073_v31 = vrot.slane %v353_v29, 2  ;;  %370 = vrot.lane.b32.xlu2 %v353_v29, %s1605_s1  ;;  %v355_v46 = vmul.f32 %v353_v29, %v1680_v16 }
 0x6c1   :  { %v1825_v33 = vsel %vm1009_vm1, %v1096_v63, %v1073_v31  ;;  %v1157_v31 = vld [vmem:[#allocation5 + $0x40] sm:$0xff] }
 0x6c2   :  { %v733_v34 = vpop.permute.xlu2 %732 }
 0x6c3   :  { %v735_v36 = vadd.f32 %v733_v34, %v725_v32  ;;  %v1155_v32 = vld [vmem:[#allocation5 + $0x30] sm:$0xff]  ;;  %v1154_v34 = vld [vmem:[#allocation5 + $0x28] sm:$0xff] }
 0x6c5   :  { %v736_v37 = vadd.f32 %v735_v36, %v718_v35 }
 0x6c7   :  { %v1116_v40 = vrot.slane %v736_v37, 2  ;;  %714 = vrot.lane.b32.xlu2 %v712_v39, %s1605_s1  ;;  %753 = vrot.lane.b32.xlu1 %v736_v37, %s1605_s1  ;;  %v738_v49 = vmul.f32 %v736_v37, %v1680_v16 }
 0x6c9   :  { %v1833_v42 = vsel %vm1009_vm1, %v1139_v52, %v1116_v40 }
 0x6ca   :  { %v332_v43 = vpop.permute.xlu2 %331 }
 0x6cb   :  { %v334_v44 = vsub.f32 %v328_v41, %v332_v43 }
 0x6cd   :  { %v1835_v45 = vadd.f32 %v335_v27, %v334_v44  ;;  %v1158_v27 = vld [vmem:[#allocation5 + $0x48] sm:$0xff] }
 0x6cf   :  { %v980_v47 = vrot.slane %v1835_v45, 2  ;;  %357 = vrot.lane.b32.xlu1 %v355_v46, %s1605_s1  ;;  %365 = vrot.lane.b32.xlu2 %v1835_v45, %s1605_s1  ;;  %v354_v22 = vmul.f32 %v1835_v45, %v1680_v16 }
 0x6d1   :  { %v1843_v48 = vsel %vm1009_vm1, %v1008_v5, %v980_v47 }
 0x6d7   :  { %740 = vrot.lane.b32.xlu1 %v738_v49, %s1605_s1 }
 0x703   :  { %v93_v50 = vpop.xlane.xlu0 %92 }
 0x704   :  { %v97_v51 = vmul.f32 %v93_v50, %v1641_v13 }
 0x706   :  { %v101_v52 = vadd.f32 1e-05, %v97_v51 }
 0x708   :  { %1489 = vrsqrt.f32 %v101_v52  ;;  %vm138_vm2 = vweird.f32 %v101_v52 }
 0x70e   :  { %v1490_v53 = vpop.eup %1489 }
 0x70f   :  { %v133_v54 = vmul.f32 %v1490_v53, %v101_v52  ;;  %vm139_vm3 = vweird.f32 %v1490_v53 }
 0x710   :  { %vm140_vm4 = vmor %vm138_vm2, %vm139_vm3 }
 0x711   :  { %v134_v55 = vmul.f32 %v1490_v53, %v133_v54 }
 0x713   :  { %v135_v56 = vmul.f32 0.5, %v134_v55 }
 0x715   :  { %v136_v57 = vsub.f32 1.5, %v135_v56 }
 0x717   :  { %v137_v60 = vmul.f32 %v1490_v53, %v136_v57 }
 0x719   :  { %v141_v61 = vsel %vm140_vm4, %v1490_v53, %v137_v60  ;;  %v371_v62 = vpop.permute.xlu2 %370 }
 0x71a   :  { %v373_v38 = vmul.f32 %v371_v62, %v1680_v16  ;;  %v145_v63 = vmul.f32 %v141_v61, %v77_v21  ;;  %v1160_v21 = vld [vmem:[#allocation5 + $0x58] sm:$0xff] }
 0x71c   :  { %375 = vrot.lane.b32.xlu2 %v373_v38, %s1605_s1  ;;  %v150_v13 = vmul.f32 %v1637_v11, %v145_v63  ;;  %v1271_v38 = vld [vmem:[#allocation5 + $0xe0] sm:$0xff]  ;;  %v1270_v63 = vld [vmem:[#allocation5 + $0xd8] sm:$0xff] }
 0x71d   :  { %1299 = vmatpush.msra.mxu3 %v1271_v38 }
 0x71e   :  { %v158_v1 = vadd.f32 %v1660_v58, %v150_v13  ;;  %v1169_v58 = vld [vmem:[#allocation5 + $0xa0] sm:$0xff]  ;;  %v1269_v13 = vld [vmem:[#allocation5 + $0xd0] sm:$0xff] }
 0x71f   :  { %1174 = vmatpush.msrb.mxu0 %v1169_v58  ;;  %1456 = vmatpush.msra.mxu1 %v1169_v58 }
 0x720   :  { %1443 = vmatmul.msk.f32.gmra.mxu0 %vm50_vm0, %v158_v1  ;;  %1447 = vmatmul.msk.f32.gmra.mxu2 %vm50_vm0, %v158_v1 }
 0x721   :  { %v715_v3 = vpop.permute.xlu2 %714  ;;  %1175 = vmatpush.msrb.mxu0 %v1168_v7  ;;  %1457 = vmatpush.msra.mxu1 %v1168_v7 }
 0x722   :  { %v717_v4 = vsub.f32 %v711_v2, %v715_v3  ;;  %1300 = vmatpush.msra.mxu3 %v1270_v63 }
 0x723   :  { %1176 = vmatpush.msrb.mxu0 %v1167_v8  ;;  %1458 = vmatpush.msra.mxu1 %v1167_v8 }
 0x724   :  { %v1856_v5 = vadd.f32 %v718_v35, %v717_v4  ;;  %1301 = vmatpush.msra.mxu3 %v1269_v13  ;;  %v1220_v4 = vpop.f32.mrf.mxu2 }
 0x725   :  { %1177 = vmatpush.msrb.mxu0 %v1166_v59  ;;  %1459 = vmatpush.msra.mxu1 %v1166_v59 }
 0x726   :  { %v1030_v6 = vrot.slane %v1856_v5, 2  ;;  %748 = vrot.lane.b32.xlu0 %v1856_v5, %s1605_s1  ;;  %v737_v46 = vmul.f32 %v1856_v5, %v1680_v16 }
 0x727   :  { %1178 = vmatpush.msrb.mxu0 %v1165_v9  ;;  %1460 = vmatpush.msra.mxu1 %v1165_v9 }
 0x728   :  { %v1863_v11 = vsel %vm1009_vm1, %v1805_v0, %v1030_v6 }
 0x729   :  { %1179 = vmatpush.msrb.mxu0 %v1164_v10  ;;  %1461 = vmatpush.msra.mxu1 %v1164_v10  ;;  %v366_v35 = vpop.permute.xlu2 %365 }
 0x72a   :  { %v368_v36 = vmul.f32 %v366_v35, %v1680_v16 }
 0x72b   :  { %1180 = vmatpush.msrb.mxu0 %v1163_v12  ;;  %1462 = vmatpush.msra.mxu1 %v1163_v12 }
 0x72d   :  { %1181 = vmatpush.msrb.mxu0 %v1162_v17  ;;  %1463 = vmatpush.msra.mxu1 %v1162_v17 }
 0x72f   :  { %1182 = vmatpush.msrb.mxu0 %v1161_v20  ;;  %1464 = vmatpush.msra.mxu1 %v1161_v20 }
 0x731   :  { %1183 = vmatpush.msrb.mxu0 %v1160_v21  ;;  %1465 = vmatpush.msra.mxu1 %v1160_v21 }
 0x733   :  { %1184 = vmatpush.msrb.mxu0 %v1159_v23  ;;  %1466 = vmatpush.msra.mxu1 %v1159_v23 }
 0x735   :  { %1185 = vmatpush.msrb.mxu0 %v1158_v27  ;;  %1467 = vmatpush.msra.mxu1 %v1158_v27 }
 0x737   :  { %1186 = vmatpush.msrb.mxu0 %v1157_v31  ;;  %1468 = vmatpush.msra.mxu1 %v1157_v31 }
 0x739   :  { %v754_v14 = vpop.permute.xlu1 %753  ;;  %1187 = vmatpush.msrb.mxu0 %v1156_v15  ;;  %1469 = vmatpush.msra.mxu1 %v1156_v15 }
 0x73a   :  { %v756_v0 = vmul.f32 %v754_v14, %v1680_v16 }
 0x73b   :  { %1188 = vmatpush.msrb.mxu0 %v1155_v32  ;;  %1470 = vmatpush.msra.mxu1 %v1155_v32 }
 0x73c   :  { %758 = vrot.lane.b32.xlu2 %v756_v0, %s1605_s1 }
 0x73d   :  { %1189 = vmatpush.msrb.mxu0 %v1154_v34  ;;  %1471 = vmatpush.msra.mxu1 %v1154_v34 }
 0x741   :  { %v358_v24 = vpop.permute.xlu1 %357 }
 0x742   :  { %v360_v26 = vsub.f32 %v354_v22, %v358_v24 }
 0x744   :  { %v1870_v28 = vadd.f32 %v361_v25, %v360_v26 }
 0x746   :  { %v982_v29 = vrot.slane %v1870_v28, 1  ;;  %389 = vrot.lane.b32.xlu0 %v1870_v28, %s1605_s1  ;;  %v380_v24 = vmul.f32 %v1870_v28, %v1680_v16 }
 0x748   :  { %v1012_v30 = vsel %vm1011_vm5, %v1843_v48, %v982_v29  ;;  %v744_v48 = vrot.slane %v1687_v19, 7 }
 0x749   :  { %v741_v45 = vpop.permute.xlu1 %740 }
 0x74a   :  { %v743_v47 = vsub.f32 %v737_v46, %v741_v45 }
 0x74c   :  { %v1885_v50 = vadd.f32 %v744_v48, %v743_v47 }
 0x74e   :  { %v1032_v54 = vrot.slane %v1885_v50, 1  ;;  %v763_v28 = vmul.f32 %v1885_v50, %v1680_v16 }
 0x750   :  { %v1055_v56 = vsel %vm1011_vm5, %v1863_v11, %v1032_v54 }
 0x776   :  { %v376_v37 = vpop.permute.xlu2 %375 }
 0x777   :  { %v378_v39 = vadd.f32 %v376_v37, %v368_v36 }
 0x779   :  { %v379_v40 = vadd.f32 %v378_v39, %v361_v25 }
 0x77b   :  { %v1075_v41 = vrot.slane %v379_v40, 1  ;;  %394 = vrot.lane.b32.xlu2 %v379_v40, %s1605_s1  ;;  %v381_v62 = vmul.f32 %v379_v40, %v1680_v16 }
 0x77d   :  { %v1098_v43 = vsel %vm1011_vm5, %v1825_v33, %v1075_v41 }
 0x77e   :  { %v1150_v44 = vsel %vm1149_vm6, %v1012_v30, %v1098_v43 }
 0x77f   :  { %1190 = vmatmul.f32.vlgmr.msrb.gmra.mxu0 %v1150_v44 }
 0x796   :  { %v759_v52 = vpop.permute.xlu2 %758 }
 0x798   :  { %v749_v49 = vpop.permute.xlu0 %748 }
 0x799   :  { %v751_v51 = vmul.f32 %v749_v49, %v1680_v16 }
 0x79b   :  { %v761_v53 = vadd.f32 %v759_v52, %v751_v51 }
 0x79d   :  { %v762_v33 = vadd.f32 %v761_v53, %v744_v48  ;;  %v1901_v1 = vpop.f32.mrf.mxu0  ;;  %v412_v48 = vrot.slane %v1684_v18, 1 }
 0x79f   :  { %777 = vrot.lane.b32.xlu2 %v762_v33, %s1605_s1  ;;  %v1118_v55 = vrot.slane %v762_v33, 1  ;;  %v764_v7 = vmul.f32 %v762_v33, %v1680_v16 }
 0x7a1   :  { %v1141_v57 = vsel %vm1011_vm5, %v1833_v42, %v1118_v55  ;;  %v1268_v42 = vld [vmem:[#allocation5 + $0xc8] sm:$0xff] }
 0x7a2   :  { %v1152_v19 = vsel %vm1149_vm6, %v1055_v56, %v1141_v57  ;;  %1302 = vmatpush.msra.mxu3 %v1268_v42  ;;  %v795_v57 = vrot.slane %v1901_v1, 1 }
 0x7a3   :  { %1196 = vmatmul.f32.vlgmr.msra.gmra.mxu1 %v1152_v19 }
 0x7a7   :  { %772 = vrot.lane.b32.xlu2 %v1885_v50, %s1605_s1 }
 0x7b8   :  { %v390_v17 = vpop.permute.xlu0 %389 }
 0x7b9   :  { %v392_v20 = vmul.f32 %v390_v17, %v1680_v16 }
 0x7d5   :  { %v395_v60 = vpop.permute.xlu2 %394 }
 0x7d6   :  { %v397_v61 = vmul.f32 %v395_v60, %v1680_v16 }
 0x7d8   :  { %399 = vrot.lane.b32.xlu1 %v397_v61, %s1605_s1 }
 0x7e0   :  { %383 = vrot.lane.b32.xlu1 %v381_v62, %s1605_s1 }
 0x7f9   :  { %v778_v2 = vpop.permute.xlu2 %777 }
 0x7fa   :  { %v780_v3 = vmul.f32 %v778_v2, %v1680_v16 }
 0x7fc   :  { %v1191_v5 = vpop.f32.mrf.mxu0  ;;  %782 = vrot.lane.b32.xlu0 %v780_v3, %s1605_s1 }
 0x7fd   :  { %v1221_v6 = vadd.f32 %v1220_v4, %v1191_v5 }
 0x7ff   :  { %v1232_v11 = vmul.f32 %v1221_v6, %v1221_v6 }
 0x801   :  { %v1236_v58 = vmul.f32 %v1232_v11, %v1221_v6  ;;  %v773_v29 = vpop.permute.xlu2 %772 }
 0x802   :  { %v775_v30 = vmul.f32 %v773_v29, %v1680_v16 }
 0x803   :  { %v1240_v8 = vmul.f32 0.044715, %v1236_v58 }
 0x804   :  { %766 = vrot.lane.b32.xlu0 %v764_v7, %s1605_s1  ;;  %v438_v7 = vrot.slane %v1684_v18, 2 }
 0x805   :  { %v1244_v59 = vadd.f32 %v1240_v8, %v1221_v6 }
 0x807   :  { %v1248_v9 = vmul.f32 0.7978846, %v1244_v59 }
 0x809   :  { %1491 = vtanh.f32 %v1248_v9 }
 0x80f   :  { %v1492_v10 = vpop.eup %1491 }
 0x810   :  { %v1256_v12 = vadd.f32 1.0, %v1492_v10 }
 0x812   :  { %v1260_v14 = vmul.f32 0.5, %v1256_v12 }
 0x814   :  { %v1264_v0 = vmul.f32 %v1260_v14, %v1221_v6 }
 0x816   :  { %1448 = vmatmul.msk.f32.vlgmr.msra.gmra.mxu3 %vm50_vm0, %v1264_v0 }
 0x84a   :  { %v400_v21 = vpop.permute.xlu1 %399 }
 0x84b   :  { %v402_v22 = vadd.f32 %v400_v21, %v392_v20 }
 0x84d   :  { %v1910_v23 = vadd.f32 %v402_v22, %v1684_v18 }
 0x84f   :  { %421 = vrot.lane.b32.xlu2 %v1910_v23, %s1605_s1  ;;  %v405_v40 = vmul.f32 %v1910_v23, %v1680_v16 }
 0x852   :  { %v384_v25 = vpop.permute.xlu1 %383 }
 0x853   :  { %v386_v26 = vsub.f32 %v380_v24, %v384_v25 }
 0x855   :  { %v1917_v27 = vadd.f32 %v386_v26, %v1684_v18 }
 0x857   :  { %416 = vrot.lane.b32.xlu2 %v1917_v27, %s1605_s1  ;;  %v404_v51 = vmul.f32 %v1917_v27, %v1680_v16 }
 0x86e   :  { %v783_v31 = vpop.permute.xlu0 %782 }
 0x86f   :  { %v785_v15 = vadd.f32 %v783_v31, %v775_v30  ;;  %v821_v31 = vrot.slane %v1901_v1, 2 }
 0x871   :  { %v1923_v32 = vadd.f32 %v785_v15, %v1901_v1 }
 0x873   :  { %804 = vrot.lane.b32.xlu1 %v1923_v32, %s1605_s1  ;;  %v788_v44 = vmul.f32 %v1923_v32, %v1680_v16 }
 0x876   :  { %v767_v34 = vpop.permute.xlu0 %766 }
 0x877   :  { %v769_v35 = vsub.f32 %v763_v28, %v767_v34 }
 0x879   :  { %v1930_v36 = vadd.f32 %v769_v35, %v1901_v1 }
 0x87b   :  { %799 = vrot.lane.b32.xlu1 %v1930_v36, %s1605_s1  ;;  %v787_v61 = vmul.f32 %v1930_v36, %v1680_v16 }
 0x8a9   :  { %v422_v37 = vpop.permute.xlu2 %421 }
 0x8aa   :  { %v424_v39 = vmul.f32 %v422_v37, %v1680_v16 }
 0x8ac   :  { %426 = vrot.lane.b32.xlu0 %v424_v39, %s1605_s1 }
 0x8b1   :  { %v417_v45 = vpop.permute.xlu2 %416 }
 0x8b2   :  { %v419_v46 = vmul.f32 %v417_v45, %v1680_v16 }
 0x8b4   :  { %407 = vrot.lane.b32.xlu0 %v405_v40, %s1605_s1 }
 0x8e5   :  { %v805_v41 = vpop.permute.xlu1 %804 }
 0x8e6   :  { %v807_v43 = vmul.f32 %v805_v41, %v1680_v16 }
 0x8e8   :  { %809 = vrot.lane.b32.xlu2 %v807_v43, %s1605_s1 }
 0x8ed   :  { %v800_v33 = vpop.permute.xlu1 %799 }
 0x8ee   :  { %v802_v55 = vmul.f32 %v800_v33, %v1680_v16  ;;  %v464_v33 = vrot.slane %v1684_v18, 3 }
 0x8f0   :  { %790 = vrot.lane.b32.xlu2 %v788_v44, %s1605_s1 }
 0x91e   :  { %v427_v47 = vpop.permute.xlu0 %426 }
 0x91f   :  { %v429_v49 = vadd.f32 %v427_v47, %v419_v46 }
 0x921   :  { %v430_v50 = vadd.f32 %v429_v49, %v412_v48  ;;  %v1986_v49 = vld [vmem:[#allocation5 + $0x1] sm:$0x1] }
 0x923   :  { %447 = vrot.lane.b32.xlu1 %v430_v50, %s1605_s1  ;;  %v432_v2 = vmul.f32 %v430_v50, %v1680_v16  ;;  %v1077_v59 = vrot.slane %v430_v50, 7 }
 0x925   :  { %v1099_v12 = vsel %vm999_vm12, %v1910_v23, %v1077_v59 }
 0x926   :  { %v408_v52 = vpop.permute.xlu0 %407 }
 0x927   :  { %v410_v53 = vsub.f32 %v404_v51, %v408_v52 }
 0x929   :  { %v414_v54 = vadd.f32 %v412_v48, %v410_v53 }
 0x92b   :  { %442 = vrot.lane.b32.xlu1 %v414_v54, %s1605_s1  ;;  %v431_v0 = vmul.f32 %v414_v54, %v1680_v16  ;;  %v984_v21 = vrot.slane %v414_v54, 7 }
 0x92d   :  { %v1013_v25 = vsel %vm999_vm12, %v1917_v27, %v984_v21 }
 0x942   :  { %v810_v56 = vpop.permute.xlu2 %809 }
 0x943   :  { %v812_v19 = vadd.f32 %v810_v56, %v802_v55 }
 0x945   :  { %v813_v60 = vadd.f32 %v812_v19, %v795_v57 }
 0x947   :  { %830 = vrot.lane.b32.xlu0 %v813_v60, %s1605_s1  ;;  %v815_v5 = vmul.f32 %v813_v60, %v1680_v16  ;;  %v1120_v28 = vrot.slane %v813_v60, 7 }
 0x949   :  { %v1142_v37 = vsel %vm999_vm12, %v1923_v32, %v1120_v28 }
 0x94a   :  { %v791_v62 = vpop.permute.xlu2 %790 }
 0x94b   :  { %v793_v38 = vsub.f32 %v787_v61, %v791_v62 }
 0x94d   :  { %v797_v63 = vadd.f32 %v795_v57, %v793_v38 }
 0x94f   :  { %825 = vrot.lane.b32.xlu0 %v797_v63, %s1605_s1  ;;  %v814_v27 = vmul.f32 %v797_v63, %v1680_v16  ;;  %v1034_v43 = vrot.slane %v797_v63, 7 }
 0x951   :  { %v1056_v46 = vsel %vm999_vm12, %v1930_v36, %v1034_v43 }
 0x995   :  { %v448_v13 = vpop.permute.xlu1 %447 }
 0x996   :  { %v450_v42 = vmul.f32 %v448_v13, %v1680_v16 }
 0x998   :  { %452 = vrot.lane.b32.xlu2 %v450_v42, %s1605_s1 }
 0x99d   :  { %v443_v6 = vpop.permute.xlu1 %442 }
 0x99e   :  { %v445_v11 = vmul.f32 %v443_v6, %v1680_v16 }
 0x9a0   :  { %434 = vrot.lane.b32.xlu2 %v432_v2, %s1605_s1 }
 0x9b9   :  { %v831_v3 = vpop.permute.xlu0 %830 }
 0x9ba   :  { %v833_v4 = vmul.f32 %v831_v3, %v1680_v16 }
 0x9bc   :  { %835 = vrot.lane.b32.xlu1 %v833_v4, %s1605_s1  ;;  %v847_v4 = vrot.slane %v1901_v1, 3 }
 0x9c1   :  { %v826_v29 = vpop.permute.xlu0 %825 }
 0x9c2   :  { %v828_v30 = vmul.f32 %v826_v29, %v1680_v16  ;;  %v490_v29 = vrot.slane %v1684_v18, 4 }
 0x9c4   :  { %817 = vrot.lane.b32.xlu1 %v815_v5, %s1605_s1 }
 0x9f2   :  { %v453_v58 = vpop.permute.xlu2 %452 }
 0x9f3   :  { %v455_v8 = vadd.f32 %v453_v58, %v445_v11 }
 0x9f5   :  { %v456_v9 = vadd.f32 %v455_v8, %v438_v7 }
 0x9f7   :  { %v1079_v10 = vrot.slane %v456_v9, 6  ;;  %473 = vrot.lane.b32.xlu0 %v456_v9, %s1605_s1  ;;  %v458_v16 = vmul.f32 %v1986_v49, %v456_v9 }
 0x9f9   :  { %v1100_v14 = vsel %vm1001_vm11, %v1099_v12, %v1079_v10 }
 0x9fa   :  { %v435_v17 = vpop.permute.xlu2 %434 }
 0x9fb   :  { %v437_v20 = vsub.f32 %v431_v0, %v435_v17 }
 0x9fd   :  { %v440_v22 = vadd.f32 %v438_v7, %v437_v20 }
 0x9ff   :  { %v986_v24 = vrot.slane %v440_v22, 6  ;;  %468 = vrot.lane.b32.xlu0 %v440_v22, %s1605_s1  ;;  %v457_v60 = vmul.f32 %v1986_v49, %v440_v22 }
 0xa01   :  { %v1014_v26 = vsel %vm1001_vm11, %v1013_v25, %v986_v24 }
 0xa2e   :  { %v836_v23 = vpop.permute.xlu1 %835 }
 0xa2f   :  { %v838_v15 = vadd.f32 %v836_v23, %v828_v30 }
 0xa31   :  { %v839_v34 = vadd.f32 %v838_v15, %v821_v31 }
 0xa33   :  { %v1122_v35 = vrot.slane %v839_v34, 6  ;;  %856 = vrot.lane.b32.xlu2 %v839_v34, %s1605_s1  ;;  %v841_v36 = vmul.f32 %v1986_v49, %v839_v34 }
 0xa35   :  { %v1143_v39 = vsel %vm1001_vm11, %v1142_v37, %v1122_v35 }
 0xa36   :  { %v818_v40 = vpop.permute.xlu1 %817 }
 0xa37   :  { %v820_v41 = vsub.f32 %v814_v27, %v818_v40 }
 0xa39   :  { %v823_v44 = vadd.f32 %v821_v31, %v820_v41 }
 0xa3b   :  { %v1036_v45 = vrot.slane %v823_v44, 6  ;;  %851 = vrot.lane.b32.xlu2 %v823_v44, %s1605_s1  ;;  %v840_v7 = vmul.f32 %v1986_v49, %v823_v44  ;;  %v873_v44 = vrot.slane %v1901_v1, 4 }
 0xa3d   :  { %v1057_v47 = vsel %vm1001_vm11, %v1056_v46, %v1036_v45 }
 0xa69   :  { %v474_v48 = vpop.permute.xlu0 %473 }
 0xa6a   :  { %v476_v32 = vmul.f32 %v1986_v49, %v474_v48 }
 0xa6c   :  { %478 = vrot.lane.b32.xlu1 %v476_v32, %s1605_s1 }
 0xa71   :  { %v469_v52 = vpop.permute.xlu0 %468 }
 0xa72   :  { %v471_v53 = vmul.f32 %v1986_v49, %v469_v52 }
 0xa74   :  { %460 = vrot.lane.b32.xlu1 %v458_v16, %s1605_s1 }
 0xa8d   :  { %v857_v50 = vpop.permute.xlu2 %856 }
 0xa8e   :  { %v859_v51 = vmul.f32 %v1986_v49, %v857_v50 }
 0xa90   :  { %861 = vrot.lane.b32.xlu0 %v859_v51, %s1605_s1 }
 0xa95   :  { %v852_v42 = vpop.permute.xlu2 %851 }
 0xa96   :  { %v854_v2 = vmul.f32 %v1986_v49, %v852_v42 }
 0xa98   :  { %843 = vrot.lane.b32.xlu0 %v841_v36, %s1605_s1 }
 0xade   :  { %v479_v54 = vpop.permute.xlu1 %478 }
 0xadf   :  { %v481_v55 = vadd.f32 %v479_v54, %v471_v53 }
 0xae1   :  { %v482_v56 = vadd.f32 %v481_v55, %v464_v33 }
 0xae3   :  { %v1081_v57 = vrot.slane %v482_v56, 5  ;;  %499 = vrot.lane.b32.xlu2 %v482_v56, %s1605_s1  ;;  %v484_v17 = vmul.f32 %v1986_v49, %v482_v56 }
 0xae5   :  { %v1101_v19 = vsel %vm1003_vm13, %v1100_v14, %v1081_v57 }
 0xae6   :  { %v461_v61 = vpop.permute.xlu1 %460 }
 0xae7   :  { %v463_v62 = vsub.f32 %v457_v60, %v461_v61 }
 0xae9   :  { %v466_v38 = vadd.f32 %v464_v33, %v463_v62  ;;  %v516_v62 = vrot.slane %v1684_v18, 5 }
 0xaeb   :  { %v988_v63 = vrot.slane %v466_v38, 5  ;;  %494 = vrot.lane.b32.xlu2 %v466_v38, %s1605_s1  ;;  %v483_v15 = vmul.f32 %v1986_v49, %v466_v38 }
 0xaed   :  { %v1015_v13 = vsel %vm1003_vm13, %v1014_v26, %v988_v63 }
 0xb02   :  { %v862_v3 = vpop.permute.xlu0 %861 }
 0xb03   :  { %v864_v5 = vadd.f32 %v862_v3, %v854_v2 }
 0xb05   :  { %v865_v6 = vadd.f32 %v864_v5, %v847_v4 }
 0xb07   :  { %v1124_v11 = vrot.slane %v865_v6, 5  ;;  %882 = vrot.lane.b32.xlu1 %v865_v6, %s1605_s1  ;;  %v867_v22 = vmul.f32 %v1986_v49, %v865_v6 }
 0xb09   :  { %v1144_v58 = vsel %vm1003_vm13, %v1143_v39, %v1124_v11 }
 0xb0a   :  { %v844_v8 = vpop.permute.xlu0 %843 }
 0xb0b   :  { %v846_v59 = vsub.f32 %v840_v7, %v844_v8 }
 0xb0d   :  { %v849_v9 = vadd.f32 %v847_v4, %v846_v59  ;;  %v899_v59 = vrot.slane %v1901_v1, 5 }
 0xb0f   :  { %v1038_v10 = vrot.slane %v849_v9, 5  ;;  %877 = vrot.lane.b32.xlu1 %v849_v9, %s1605_s1  ;;  %v866_v48 = vmul.f32 %v1986_v49, %v849_v9 }
 0xb11   :  { %v1058_v12 = vsel %vm1003_vm13, %v1057_v47, %v1038_v10 }
 0xb3d   :  { %v500_v14 = vpop.permute.xlu2 %499 }
 0xb3e   :  { %v502_v0 = vmul.f32 %v1986_v49, %v500_v14 }
 0xb40   :  { %504 = vrot.lane.b32.xlu0 %v502_v0, %s1605_s1 }
 0xb45   :  { %v495_v24 = vpop.permute.xlu2 %494 }
 0xb46   :  { %v497_v25 = vmul.f32 %v1986_v49, %v495_v24 }
 0xb48   :  { %486 = vrot.lane.b32.xlu0 %v484_v17, %s1605_s1 }
 0xb79   :  { %v883_v20 = vpop.permute.xlu1 %882 }
 0xb7a   :  { %v885_v21 = vmul.f32 %v1986_v49, %v883_v20 }
 0xb7c   :  { %887 = vrot.lane.b32.xlu2 %v885_v21, %s1605_s1 }
 0xb81   :  { %v878_v40 = vpop.permute.xlu1 %877 }
 0xb82   :  { %v880_v41 = vmul.f32 %v1986_v49, %v878_v40 }
 0xb84   :  { %869 = vrot.lane.b32.xlu2 %v867_v22, %s1605_s1 }
 0xbb2   :  { %v505_v26 = vpop.permute.xlu0 %504 }
 0xbb3   :  { %v507_v30 = vadd.f32 %v505_v26, %v497_v25 }
 0xbb5   :  { %v508_v23 = vadd.f32 %v507_v30, %v490_v29 }
 0xbb7   :  { %v1083_v31 = vrot.slane %v508_v23, 4  ;;  %525 = vrot.lane.b32.xlu1 %v508_v23, %s1605_s1  ;;  %v510_v33 = vmul.f32 %v1986_v49, %v508_v23 }
 0xbb9   :  { %v1102_v28 = vsel %vm1005_vm14, %v1101_v19, %v1083_v31 }
 0xbba   :  { %v487_v34 = vpop.permute.xlu0 %486 }
 0xbbb   :  { %v489_v35 = vsub.f32 %v483_v15, %v487_v34 }
 0xbbd   :  { %v492_v37 = vadd.f32 %v490_v29, %v489_v35  ;;  %v542_v35 = vrot.slane %v1684_v18, 6 }
 0xbbf   :  { %v990_v39 = vrot.slane %v492_v37, 4  ;;  %520 = vrot.lane.b32.xlu1 %v492_v37, %s1605_s1  ;;  %v509_v42 = vmul.f32 %v1986_v49, %v492_v37 }
 0xbc1   :  { %v1016_v27 = vsel %vm1005_vm14, %v1015_v13, %v990_v39 }
 0xbd6   :  { %v888_v43 = vpop.permute.xlu2 %887 }
 0xbd7   :  { %v890_v45 = vadd.f32 %v888_v43, %v880_v41 }
 0xbd9   :  { %v891_v46 = vadd.f32 %v890_v45, %v873_v44 }
 0xbdb   :  { %v1126_v47 = vrot.slane %v891_v46, 4  ;;  %908 = vrot.lane.b32.xlu0 %v891_v46, %s1605_s1  ;;  %v893_v57 = vmul.f32 %v1986_v49, %v891_v46 }
 0xbdd   :  { %v1145_v32 = vsel %vm1005_vm14, %v1144_v58, %v1126_v47 }
 0xbde   :  { %v870_v16 = vpop.permute.xlu2 %869 }
 0xbdf   :  { %v872_v50 = vsub.f32 %v866_v48, %v870_v16 }
 0xbe1   :  { %v875_v51 = vadd.f32 %v873_v44, %v872_v50 }
 0xbe3   :  { %v1040_v36 = vrot.slane %v875_v51, 4  ;;  %903 = vrot.lane.b32.xlu0 %v875_v51, %s1605_s1  ;;  %v892_v14 = vmul.f32 %v1986_v49, %v875_v51  ;;  %v925_v51 = vrot.slane %v1901_v1, 6 }
 0xbe5   :  { %v1059_v52 = vsel %vm1005_vm14, %v1058_v12, %v1040_v36 }
 0xc29   :  { %v526_v53 = vpop.permute.xlu1 %525 }
 0xc2a   :  { %v528_v54 = vmul.f32 %v1986_v49, %v526_v53 }
 0xc2c   :  { %530 = vrot.lane.b32.xlu2 %v528_v54, %s1605_s1 }
 0xc31   :  { %v521_v19 = vpop.permute.xlu1 %520 }
 0xc32   :  { %v523_v60 = vmul.f32 %v1986_v49, %v521_v19 }
 0xc34   :  { %512 = vrot.lane.b32.xlu2 %v510_v33, %s1605_s1 }
 0xc4d   :  { %v909_v55 = vpop.permute.xlu0 %908 }
 0xc4e   :  { %v911_v56 = vmul.f32 %v1986_v49, %v909_v55 }
 0xc50   :  { %913 = vrot.lane.b32.xlu1 %v911_v56, %s1605_s1 }
 0xc55   :  { %v904_v58 = vpop.permute.xlu0 %903 }
 0xc56   :  { %v906_v7 = vmul.f32 %v1986_v49, %v904_v58 }
 0xc58   :  { %895 = vrot.lane.b32.xlu1 %v893_v57, %s1605_s1 }
 0xc86   :  { %v531_v61 = vpop.permute.xlu2 %530 }
 0xc87   :  { %v533_v38 = vadd.f32 %v531_v61, %v523_v60 }
 0xc89   :  { %v534_v63 = vadd.f32 %v533_v38, %v516_v62 }
 0xc8b   :  { %v1085_v13 = vrot.slane %v534_v63, 3  ;;  %551 = vrot.lane.b32.xlu0 %v534_v63, %s1605_s1  ;;  %v536_v29 = vmul.f32 %v1986_v49, %v534_v63 }
 0xc8d   :  { %v1103_v2 = vsel %vm1007_vm15, %v1102_v28, %v1085_v13 }
 0xc8e   :  { %v513_v3 = vpop.permute.xlu2 %512 }
 0xc8f   :  { %v515_v4 = vsub.f32 %v509_v42, %v513_v3 }
 0xc91   :  { %v518_v5 = vadd.f32 %v516_v62, %v515_v4  ;;  %v1516_v62 = vld [vmem:[#allocation5] ss:$0 sm:$0xff] }
 0xc93   :  { %v992_v6 = vrot.slane %v518_v5, 3  ;;  %546 = vrot.lane.b32.xlu0 %v518_v5, %s1605_s1  ;;  %v535_v41 = vmul.f32 %v1986_v49, %v518_v5 }
 0xc95   :  { %v1017_v11 = vsel %vm1007_vm15, %v1016_v27, %v992_v6 }
 0xcc2   :  { %v914_v8 = vpop.permute.xlu1 %913 }
 0xcc3   :  { %v916_v9 = vadd.f32 %v914_v8, %v906_v7  ;;  %v1304_v7 = vpop.f32.mrf.mxu3 }
 0xcc5   :  { %v917_v10 = vadd.f32 %v916_v9, %v899_v59 }
 0xcc7   :  { %v1128_v12 = vrot.slane %v917_v10, 3  ;;  %934 = vrot.lane.b32.xlu2 %v917_v10, %s1605_s1  ;;  %v919_v31 = vmul.f32 %v1986_v49, %v917_v10 }
 0xcc9   :  { %v1146_v0 = vsel %vm1007_vm15, %v1145_v32, %v1128_v12 }
 0xcca   :  { %v896_v17 = vpop.permute.xlu1 %895 }
 0xccb   :  { %v898_v20 = vsub.f32 %v892_v14, %v896_v17  ;;  %v951_v17 = vrot.slane %v1901_v1, 7 }
 0xccd   :  { %v901_v21 = vadd.f32 %v899_v59, %v898_v20 }
 0xccf   :  { %v1042_v22 = vrot.slane %v901_v21, 3  ;;  %929 = vrot.lane.b32.xlu2 %v901_v21, %s1605_s1  ;;  %v918_v33 = vmul.f32 %v1986_v49, %v901_v21 }
 0xcd1   :  { %v1060_v24 = vsel %vm1007_vm15, %v1059_v52, %v1042_v22 }
 0xcfd   :  { %v552_v25 = vpop.permute.xlu0 %551 }
 0xcfe   :  { %v554_v26 = vmul.f32 %v1986_v49, %v552_v25 }
 0xd00   :  { %556 = vrot.lane.b32.xlu1 %v554_v26, %s1605_s1 }
 0xd05   :  { %v547_v15 = vpop.permute.xlu0 %546 }
 0xd06   :  { %v549_v28 = vmul.f32 %v1986_v49, %v547_v15 }
 0xd08   :  { %538 = vrot.lane.b32.xlu1 %v536_v29, %s1605_s1 }
 0xd21   :  { %v935_v30 = vpop.permute.xlu2 %934 }
 0xd22   :  { %v937_v23 = vmul.f32 %v1986_v49, %v935_v30 }
 0xd24   :  { %939 = vrot.lane.b32.xlu0 %v937_v23, %s1605_s1 }
 0xd29   :  { %v930_v32 = vpop.permute.xlu2 %929 }
 0xd2a   :  { %v932_v16 = vmul.f32 %v1986_v49, %v930_v32 }
 0xd2c   :  { %921 = vrot.lane.b32.xlu0 %v919_v31, %s1605_s1 }
 0xd72   :  { %v557_v34 = vpop.permute.xlu1 %556 }
 0xd73   :  { %v559_v37 = vadd.f32 %v557_v34, %v549_v28 }
 0xd75   :  { %v560_v39 = vadd.f32 %v559_v37, %v542_v35 }
 0xd77   :  { %v1087_v27 = vrot.slane %v560_v39, 2  ;;  %577 = vrot.lane.b32.xlu2 %v560_v39, %s1605_s1  ;;  %v562_v40 = vmul.f32 %v1986_v49, %v560_v39 }
 0xd79   :  { %564 = vrot.lane.b32.xlu0 %v562_v40, %s1605_s1  ;;  %v2069_v43 = vsel %vm1009_vm1, %v1103_v2, %v1087_v27  ;;  %v568_v2 = vrot.slane %v1684_v18, 7 }
 0xd7a   :  { %v539_v44 = vpop.permute.xlu1 %538 }
 0xd7b   :  { %v541_v45 = vsub.f32 %v535_v41, %v539_v44 }
 0xd7d   :  { %v544_v46 = vadd.f32 %v542_v35, %v541_v45 }
 0xd7f   :  { %v994_v47 = vrot.slane %v544_v46, 2  ;;  %572 = vrot.lane.b32.xlu2 %v544_v46, %s1605_s1  ;;  %v561_v13 = vmul.f32 %v1986_v49, %v544_v46 }
 0xd81   :  { %v1018_v48 = vsel %vm1009_vm1, %v1017_v11, %v994_v47 }
 0xd96   :  { %v940_v50 = vpop.permute.xlu0 %939 }
 0xd97   :  { %v942_v36 = vadd.f32 %v940_v50, %v932_v16 }
 0xd99   :  { %v943_v52 = vadd.f32 %v942_v36, %v925_v51 }
 0xd9b   :  { %v1130_v53 = vrot.slane %v943_v52, 2  ;;  %960 = vrot.lane.b32.xlu1 %v943_v52, %s1605_s1  ;;  %v945_v54 = vmul.f32 %v1986_v49, %v943_v52 }
 0xd9d   :  { %947 = vrot.lane.b32.xlu0 %v945_v54, %s1605_s1  ;;  %v2080_v55 = vsel %vm1009_vm1, %v1146_v0, %v1130_v53  ;;  %v1517_v53 = vld [vmem:[#allocation2] sm:$0xff] }
 0xd9e   :  { %v922_v56 = vpop.permute.xlu0 %921 }
 0xd9f   :  { %v924_v57 = vsub.f32 %v918_v33, %v922_v56  ;;  %v1197_v33 = vpop.f32.mrf.mxu1 }
 0xda1   :  { %v927_v19 = vadd.f32 %v925_v51, %v924_v57 }
 0xda3   :  { %v1044_v60 = vrot.slane %v927_v19, 2  ;;  %955 = vrot.lane.b32.xlu2 %v927_v19, %s1605_s1  ;;  %v944_v14 = vmul.f32 %v1986_v49, %v927_v19 }
 0xda5   :  { %v1061_v61 = vsel %vm1009_vm1, %v1060_v24, %v1044_v60 }
 0xdab   :  { %1272 = vrot.lane.b32.xlu2 %v1516_v62, %s1605_s1 }
 0xdd1   :  { %v578_v38 = vpop.permute.xlu2 %577 }
 0xdd2   :  { %v580_v63 = vmul.f32 %v1986_v49, %v578_v38 }
 0xdd4   :  { %582 = vrot.lane.b32.xlu1 %v580_v63, %s1605_s1 }
 0xdd9   :  { %v573_v11 = vpop.permute.xlu2 %572 }
 0xdda   :  { %v575_v37 = vmul.f32 %v1986_v49, %v573_v11 }
 0xdeb   :  { %v565_v42 = vpop.permute.xlu0 %564 }
 0xdec   :  { %v567_v3 = vsub.f32 %v561_v13, %v565_v42 }
 0xdee   :  { %v570_v4 = vadd.f32 %v568_v2, %v567_v3 }
 0xdf0   :  { %v997_v5 = vrot.slane %v570_v4, 1 }
 0xdf2   :  { %v1019_v6 = vsel %vm1011_vm5, %v1018_v48, %v997_v5 }
 0xdfd   :  { %v956_v58 = vpop.permute.xlu2 %955 }
 0xdfe   :  { %v958_v46 = vmul.f32 %v1986_v49, %v956_v58 }
 0xe05   :  { %v2090_v8 = vpop.permute.xlu2 %1272 }
 0xe06   :  { %v1305_v59 = vadd.f32 %v1304_v7, %v2090_v8 }
 0xe08   :  { %v1452_v9 = vmul.f32 -1.442695, %v1305_v59 }
 0xe0a   :  { %1493 = vpow2.f32 %v1452_v9 }
 0xe0d   :  { %v961_v10 = vpop.permute.xlu1 %960 }
 0xe0e   :  { %v963_v12 = vmul.f32 %v1986_v49, %v961_v10 }
 0xe0f   :  { %v948_v18 = vpop.permute.xlu0 %947 }
 0xe10   :  { %v1494_v0 = vpop.eup %1493  ;;  %v950_v20 = vsub.f32 %v944_v14, %v948_v18  ;;  %965 = vrot.lane.b32.xlu1 %v963_v12, %s1605_s1 }
 0xe11   :  { %v1328_v21 = vadd.f32 1.0, %v1494_v0 }
 0xe12   :  { %v953_v22 = vadd.f32 %v951_v17, %v950_v20 }
 0xe13   :  { %1495 = vrcp.f32 %v1328_v21  ;;  %v1343_v23 = vand.u32 2147483648, %v1328_v21  ;;  %v1341_v15 = vand.u32 2147483647, %v1328_v21  ;;  %vm1337_vm8 = vweird.f32 %v1328_v21 }
 0xe14   :  { %v1047_v24 = vrot.slane %v953_v22, 1 }
 0xe15   :  { %v1344_v1 = vor.u32 1.1754944e-38, %v1343_v23  ;;  %vm1342_vm10 = vcmp.eq.f32.partialorder %v1341_v15, 8.507059e+37 }
 0xe16   :  { %v1062_v25 = vsel %vm1011_vm5, %v1061_v61, %v1047_v24 }
 0xe19   :  { %v1496_v26 = vpop.eup %1495 }
 0xe1a   :  { %v1333_v29 = vmul.f32 %v1496_v26, %v1328_v21  ;;  %vm1338_vm7 = vweird.f32 %v1496_v26 }
 0xe1b   :  { %vm1339_vm9 = vmor %vm1337_vm8, %vm1338_vm7 }
 0xe1c   :  { %v1334_v30 = vsub.f32 1.0, %v1333_v29 }
 0xe1e   :  { %v1335_v31 = vmul.f32 %v1496_v26, %v1334_v30 }
 0xe20   :  { %v1336_v28 = vadd.f32 %v1496_v26, %v1335_v31 }
 0xe22   :  { %v1340_v34 = vsel %vm1339_vm9, %v1496_v26, %v1336_v28 }
 0xe23   :  { %v1345_v35 = vsel %vm1342_vm10, %v1344_v1, %v1340_v34 }
 0xe24   :  { %1396 = vrot.lane.b32.xlu0 %v1345_v35, %s1604_s0 }
 0xe46   :  { %v583_v39 = vpop.permute.xlu1 %582 }
 0xe47   :  { %v585_v27 = vadd.f32 %v583_v39, %v575_v37 }
 0xe49   :  { %v586_v40 = vadd.f32 %v585_v27, %v568_v2 }
 0xe4b   :  { %v1090_v41 = vrot.slane %v586_v40, 1 }
 0xe4d   :  { %v1105_v44 = vsel %vm1011_vm5, %v2069_v43, %v1090_v41  ;;  %v1223_v43 = vpop.f32.mrf.mxu2 }
 0xe4e   :  { %v1151_v45 = vsel %vm1149_vm6, %v1019_v6, %v1105_v44 }
 0xe4f   :  { %1193 = vmatmul.f32.gmra.mxu0 %v1151_v45 }
 0xe55   :  { %v1226_v56 = vpop.f32.mrf.mxu2 }
 0xe56   :  { %v1227_v49 = vadd.f32 %v1226_v56, %v1197_v33 }
 0xe58   :  { %v1234_v57 = vmul.f32 %v1227_v49, %v1227_v49 }
 0xe5a   :  { %v1238_v19 = vmul.f32 %v1234_v57, %v1227_v49 }
 0xe5c   :  { %v1242_v62 = vmul.f32 0.044715, %v1238_v19 }
 0xe5d   :  { %v1229_v10 = vpop.f32.mrf.mxu2 }
 0xe5e   :  { %v1246_v63 = vadd.f32 %v1242_v62, %v1227_v49 }
 0xe60   :  { %v1250_v3 = vmul.f32 0.7978846, %v1246_v63 }
 0xe82   :  { %v966_v47 = vpop.permute.xlu1 %965 }
 0xe83   :  { %v968_v48 = vadd.f32 %v966_v47, %v958_v46 }
 0xe85   :  { %v969_v32 = vadd.f32 %v968_v48, %v951_v17 }
 0xe87   :  { %v1133_v16 = vrot.slane %v969_v32, 1 }
 0xe89   :  { %v1148_v50 = vsel %vm1011_vm5, %v2080_v55, %v1133_v16 }
 0xe8a   :  { %v1153_v51 = vsel %vm1149_vm6, %v1062_v25, %v1148_v50 }
 0xe8b   :  { %1199 = vmatmul.f32.gmra.mxu1 %v1153_v51 }
 0xe96   :  { %v1397_v36 = vpop.permute.xlu0 %1396 }
 0xe97   :  { %v1408_v52 = vmul.f32 %v1397_v36, %v1305_v59 }
 0xe99   :  { %v1412_v54 = vadd.f32 %v1517_v53, %v1408_v52 }
 0xe9b   :  { %1416 = vst.msk [vmem:[#allocation7] sm:$0xff] %vm50_vm0, %v1412_v54 }
 0xecc   :  { %v1194_v60 = vpop.f32.mrf.mxu0 }
 0xecd   :  { %v1224_v61 = vadd.f32 %v1223_v43, %v1194_v60 }
 0xecf   :  { %v1233_v38 = vmul.f32 %v1224_v61, %v1224_v61 }
 0xed1   :  { %v1237_v55 = vmul.f32 %v1233_v38, %v1224_v61 }
 0xed3   :  { %v1241_v13 = vmul.f32 0.044715, %v1237_v55 }
 0xed5   :  { %v1245_v42 = vadd.f32 %v1241_v13, %v1224_v61 }
 0xed7   :  { %v1249_v2 = vmul.f32 0.7978846, %v1245_v42 }
 0xed9   :  { %1497 = vtanh.f32 %v1249_v2 }
 0xeda   :  { %1499 = vtanh.f32 %v1250_v3 }
 0xedf   :  { %v1498_v4 = vpop.eup %1497 }
 0xee0   :  { %v1257_v5 = vadd.f32 1.0, %v1498_v4  ;;  %v1500_v6 = vpop.eup %1499 }
 0xee1   :  { %v1258_v7 = vadd.f32 1.0, %v1500_v6 }
 0xee2   :  { %v1261_v11 = vmul.f32 0.5, %v1257_v5 }
 0xee3   :  { %v1262_v59 = vmul.f32 0.5, %v1258_v7 }
 0xee4   :  { %v1265_v58 = vmul.f32 %v1261_v11, %v1224_v61  ;;  %v1518_v11 = vld [vmem:[#allocation2 + $0x10] sm:$0xff] }
 0xee5   :  { %v1266_v9 = vmul.f32 %v1262_v59, %v1227_v49 }
 0xee6   :  { %1449 = vmatmul.msk.f32.gmra.mxu3 %vm50_vm0, %v1265_v58 }
 0xeee   :  { %1450 = vmatmul.msk.f32.gmra.mxu3 %vm50_vm0, %v1266_v9  ;;  %v1519_v9 = vld [vmem:[#allocation2 + $0x8] sm:$0xff] }
 0xf08   :  { %v1200_v12 = vpop.f32.mrf.mxu1 }
 0xf09   :  { %v1230_v14 = vadd.f32 %v1229_v10, %v1200_v12 }
 0xf0b   :  { %v1235_v18 = vmul.f32 %v1230_v14, %v1230_v14 }
 0xf0d   :  { %v1239_v0 = vmul.f32 %v1235_v18, %v1230_v14  ;;  %v1520_v18 = vld [vmem:[#allocation2 + $0x18] sm:$0xff] }
 0xf0f   :  { %v1243_v17 = vmul.f32 0.044715, %v1239_v0 }
 0xf11   :  { %v1247_v20 = vadd.f32 %v1243_v17, %v1230_v14 }
 0xf13   :  { %v1251_v21 = vmul.f32 0.7978846, %v1247_v20 }
 0xf15   :  { %1501 = vtanh.f32 %v1251_v21 }
 0xf1b   :  { %v1502_v22 = vpop.eup %1501 }
 0xf1c   :  { %v1259_v24 = vadd.f32 1.0, %v1502_v22 }
 0xf1e   :  { %v1263_v25 = vmul.f32 0.5, %v1259_v24 }
 0xf20   :  { %v1267_v26 = vmul.f32 %v1263_v25, %v1230_v14 }
 0xf22   :  { %1451 = vmatmul.msk.f32.gmra.mxu3 %vm50_vm0, %v1267_v26 }
 0xf69   :  { %v1307_v29 = vpop.f32.mrf.mxu3 }
 0xf6a   :  { %v2112_v30 = vadd.f32 %v1307_v29, %v2090_v8 }
 0xf6c   :  { %v1453_v23 = vmul.f32 -1.442695, %v2112_v30 }
 0xf6e   :  { %1503 = vpow2.f32 %v1453_v23 }
 0xf71   :  { %v1310_v31 = vpop.f32.mrf.mxu3 }
 0xf72   :  { %v1311_v15 = vadd.f32 %v1310_v31, %v2090_v8 }
 0xf74   :  { %v1504_v28 = vpop.eup %1503  ;;  %v1454_v1 = vmul.f32 -1.442695, %v1311_v15 }
 0xf75   :  { %v1329_v34 = vadd.f32 1.0, %v1504_v28 }
 0xf76   :  { %1505 = vpow2.f32 %v1454_v1 }
 0xf77   :  { %1507 = vrcp.f32 %v1329_v34  ;;  %v1358_v41 = vand.u32 2147483648, %v1329_v34  ;;  %v1356_v45 = vand.u32 2147483647, %v1329_v34  ;;  %vm1352_vm12 = vweird.f32 %v1329_v34 }
 0xf79   :  { %v1359_v48 = vor.u32 1.1754944e-38, %v1358_v41  ;;  %vm1357_vm14 = vcmp.eq.f32.partialorder %v1356_v45, 8.507059e+37 }
 0xf7c   :  { %v1506_v35 = vpop.eup %1505 }
 0xf7d   :  { %v1508_v37 = vpop.eup %1507  ;;  %v1330_v39 = vadd.f32 1.0, %v1506_v35 }
 0xf7e   :  { %v1348_v27 = vmul.f32 %v1508_v37, %v1329_v34  ;;  %vm1353_vm11 = vweird.f32 %v1508_v37 }
 0xf7f   :  { %1509 = vrcp.f32 %v1330_v39  ;;  %vm1354_vm13 = vmor %vm1352_vm12, %vm1353_vm11  ;;  %v1373_v36 = vand.u32 2147483648, %v1330_v39  ;;  %v1371_v53 = vand.u32 2147483647, %v1330_v39  ;;  %vm1367_vm1 = vweird.f32 %v1330_v39 }
 0xf80   :  { %v1349_v40 = vsub.f32 1.0, %v1348_v27 }
 0xf81   :  { %v1374_v43 = vor.u32 1.1754944e-38, %v1373_v36  ;;  %vm1372_vm3 = vcmp.eq.f32.partialorder %v1371_v53, 8.507059e+37 }
 0xf82   :  { %v1350_v44 = vmul.f32 %v1508_v37, %v1349_v40 }
 0xf84   :  { %v1351_v46 = vadd.f32 %v1508_v37, %v1350_v44 }
 0xf85   :  { %v1510_v47 = vpop.eup %1509 }
 0xf86   :  { %v1355_v32 = vsel %vm1354_vm13, %v1508_v37, %v1351_v46  ;;  %v1363_v16 = vmul.f32 %v1510_v47, %v1330_v39  ;;  %vm1368_vm15 = vweird.f32 %v1510_v47 }
 0xf87   :  { %v1360_v50 = vsel %vm1357_vm14, %v1359_v48, %v1355_v32  ;;  %vm1369_vm2 = vmor %vm1367_vm1, %vm1368_vm15 }
 0xf88   :  { %1398 = vrot.lane.b32.xlu1 %v1360_v50, %s1604_s0  ;;  %v1364_v51 = vsub.f32 1.0, %v1363_v16 }
 0xf8a   :  { %v1365_v52 = vmul.f32 %v1510_v47, %v1364_v51 }
 0xf8c   :  { %v1366_v54 = vadd.f32 %v1510_v47, %v1365_v52 }
 0xf8e   :  { %v1370_v33 = vsel %vm1369_vm2, %v1510_v47, %v1366_v54 }
 0xf8f   :  { %v1375_v56 = vsel %vm1372_vm3, %v1374_v43, %v1370_v33 }
 0xf90   :  { %1400 = vrot.lane.b32.xlu2 %v1375_v56, %s1604_s0 }
 0xfa5   :  { %v1313_v49 = vpop.f32.mrf.mxu3 }
 0xfa6   :  { %v1314_v57 = vadd.f32 %v1313_v49, %v2090_v8 }
 0xfa8   :  { %v1455_v19 = vmul.f32 -1.442695, %v1314_v57 }
 0xfaa   :  { %1511 = vpow2.f32 %v1455_v19 }
 0xfb0   :  { %v1512_v60 = vpop.eup %1511 }
 0xfb1   :  { %v1331_v61 = vadd.f32 1.0, %v1512_v60 }
 0xfb3   :  { %1513 = vrcp.f32 %v1331_v61  ;;  %v1388_v63 = vand.u32 2147483648, %v1331_v61  ;;  %v1386_v42 = vand.u32 2147483647, %v1331_v61  ;;  %vm1382_vm5 = vweird.f32 %v1331_v61 }
 0xfb5   :  { %v1389_v3 = vor.u32 1.1754944e-38, %v1388_v63  ;;  %vm1387_vm7 = vcmp.eq.f32.partialorder %v1386_v42, 8.507059e+37 }
 0xfb9   :  { %v1514_v62 = vpop.eup %1513 }
 0xfba   :  { %v1378_v38 = vmul.f32 %v1514_v62, %v1331_v61  ;;  %vm1383_vm4 = vweird.f32 %v1514_v62 }
 0xfbb   :  { %vm1384_vm6 = vmor %vm1382_vm5, %vm1383_vm4 }
 0xfbc   :  { %v1379_v55 = vsub.f32 1.0, %v1378_v38 }
 0xfbe   :  { %v1380_v13 = vmul.f32 %v1514_v62, %v1379_v55 }
 0xfc0   :  { %v1381_v2 = vadd.f32 %v1514_v62, %v1380_v13 }
 0xfc2   :  { %v1385_v4 = vsel %vm1384_vm6, %v1514_v62, %v1381_v2 }
 0xfc3   :  { %v1390_v5 = vsel %vm1387_vm7, %v1389_v3, %v1385_v4 }
 0xfc4   :  { %1402 = vrot.lane.b32.xlu0 %v1390_v5, %s1604_s0 }
 0xfea   :  { %v1401_v8 = vpop.permute.xlu2 %1400 }
 0xfeb   :  { %v1410_v6 = vmul.f32 %v1401_v8, %v1311_v15 }
 0xfed   :  { %v1414_v58 = vadd.f32 %v1518_v11, %v1410_v6 }
 0xfef   :  { %1418 = vst.msk [vmem:[#allocation7 + $0x10] sm:$0xff] %vm50_vm0, %v1414_v58 }
 0xffa   :  { %v1399_v7 = vpop.permute.xlu1 %1398 }
 0xffb   :  { %v1409_v59 = vmul.f32 %v1399_v7, %v2112_v30 }
 0xffd   :  { %v1413_v10 = vadd.f32 %v1519_v9, %v1409_v59 }
 0xfff   :  { %1417 = vst.msk [vmem:[#allocation7 + $0x8] sm:$0xff] %vm50_vm0, %v1413_v10 }
0x1036   :  { %v1403_v12 = vpop.permute.xlu0 %1402 }
0x1037   :  { %v1411_v14 = vmul.f32 %v1403_v12, %v1314_v57 }
0x1039   :  { %v1415_v0 = vadd.f32 %v1520_v18, %v1411_v14 }
0x103b   :  { %1419 = vst.msk [vmem:[#allocation7 + $0x18] sm:$0xff] %vm50_vm0, %v1415_v0 }
0x103c   :  { %1432 = dma.vmem_to_hbm [thread:$0]  %s1425_s22, 512, %s1427_s25, [#allocation4], %s1600_s17, %s1600_s17, %s1601_s18  }
0x103d   :  { %1597 = dma.done.wait [#allocation4], 512  }
0x103e   :  { %1598 = vsyncadd [#allocation4], 4294966784 }
0x103f   :  { %1437 = vsyncpa [#allocation3], 1 }
0x1040   :  { %1438 = vsyncpa [#allocation6], 1 }
0x1041   :  { %1439 = vsyncpa [#allocation4], 1 }

</bundles_post_ra>
